<compile_context>
chip_gen: v6e
topology: v6e:2x2x1
jax: 0.10.0
libtpu: 0.0.40
codegen_flags: <defaults>
</compile_context>

<pallas_src>
import functools

import numpy as np
import jax
import jax.numpy as jnp
from jax.experimental import pallas as pl
from jax.experimental.pallas import tpu as pltpu


# ----------------------------------------------------------------------------
# In-kernel helper (trace-time Python; shapes are static)
# ----------------------------------------------------------------------------
def _mm(a, b):
    """2D matmul with f32 accumulation; K == 1 degenerates to a VPU outer product."""
    if a.shape[1] == 1:
        return a * b                       # (M,1)*(1,N) -> (M,N), avoids a K=1 MXU op
    return jnp.dot(a, b, preferred_element_type=jnp.float32)


# ----------------------------------------------------------------------------
# Fused decoder kernel: one grid step == one batch sample, everything in VMEM.
# refs = [z, lin_w, lin_b]
#        + per block: [SA_stack (optional)] + [MB_stack, bias_row]
#        + [AhF, M0F, b0_row, out]
# `plan` is static: per block (has_sa, taps) where each tap is None (identity
# left factor) or an index into that block's SA_stack.
# ----------------------------------------------------------------------------
def _decoder_kernel(*refs, plan, sh):
    z_ref, lw_ref, lb_ref = refs[0], refs[1], refs[2]
    out_ref = refs[-1]

    # Linear: (1, zs) @ (zs, fs) + b; weights pre-permuted so the row is already
    # (sh, sw*c5) HWC-packed -> the torch .view(b, c5, sh, sw) is just a reshape.
    x = _mm(z_ref[0], lw_ref[...]) + lb_ref[...]
    y = x.reshape(sh, x.shape[1] // sh)                       # (sh, sw*c5)

    idx = 3
    for has_sa, taps in plan:
        if has_sa:
            sa_ref = refs[idx]
            idx += 1
        mb_ref, brow_ref = refs[idx], refs[idx + 1]
        idx += 2

        # k x k same-padding conv on the (folded-in) upsampled input, + bias + ReLU.
        acc = None
        for t, sa_idx in enumerate(taps):
            q = _mm(y, mb_ref[t])                             # (H_prev, W_i*C_i)
            if sa_idx is not None:
                q = _mm(sa_ref[sa_idx], q)                    # (H_i,   W_i*C_i)
            acc = q if acc is None else acc + q
        y = jnp.maximum(acc + brow_ref[...], 0.0)

    # Final bilinear upsample + 1x1 conv, folded into two matmuls.
    ahf_ref, m0f_ref, b0_ref = refs[idx], refs[idx + 1], refs[idx + 2]
    out = _mm(ahf_ref[...], _mm(y, m0f_ref[...])) + b0_ref[...]
    out_ref[0] = out.astype(out_ref.dtype)


# ----------------------------------------------------------------------------
# Host-side one-time weight preprocessing (pure numpy; not in the hot path)
# ----------------------------------------------------------------------------
def _bilinear_matrix(n_in, n_out):
    """Interpolation matrix matching F.upsample_bilinear (align_corners=True)."""
    if n_out > 1:
        src = np.arange(n_out, dtype=np.float64) * (n_in - 1) / (n_out - 1)
    else:
        src = np.zeros((n_out,), np.float64)
    i0 = np.clip(np.floor(src).astype(np.int64), 0, n_in - 1)
    i1 = np.minimum(i0 + 1, n_in - 1)
    frac = src - i0
    A = np.zeros((n_out, n_in), np.float32)
    A[np.arange(n_out), i0] += (1.0 - frac).astype(np.float32)
    A[np.arange(n_out), i1] += frac.astype(np.float32)
    return A


def _conv_band_matrix(W, cin, cout, w_dy):
    """Banded (W*cin, W*cout) matrix applying one conv row's dx taps in (H, W*C) layout."""
    k = w_dy.shape[-1]
    p = k // 2
    M = np.zeros((W * cin, W * cout), np.float32)
    for x_out in range(W):
        for dx in range(k):
            x_in = x_out + dx - p
            if 0 <= x_in < W:
                M[x_in * cin:(x_in + 1) * cin,
                  x_out * cout:(x_out + 1) * cout] += w_dy[:, :, dx].T
    return M


def _shift_matrix(H, s):
    """S with (S @ x)[r, :] = x[r + s, :] and zero fill outside [0, H)."""
    S = np.zeros((H, H), np.float32)
    rows = np.arange(H)
    valid = (rows + s >= 0) & (rows + s < H)
    S[rows[valid], rows[valid] + s] = 1.0
    return S


def prepare_decoder_inputs(params, out_size, channels, outc, k):
    """Fold PyTorch-convention weights into the 2D matrices the fused kernel consumes."""
    c, h, w = out_size
    c1, c2, c3, c4, c5 = channels
    sh, sw = h // 2 ** 5, w // 2 ** 5
    fs = sh * sw * c5

    # Linear, re-ordered so its output row is already (sh, sw, c5) row-major (HWC).
    Wl = np.asarray(params["lin_w"], np.float32)        # torch Linear.weight: (fs, zs)
    bl = np.asarray(params["lin_b"], np.float32)        # fs ordered (c5, sh, sw)
    zs = Wl.shape[1]
    lin_w = Wl.reshape(c5, sh, sw, zs).transpose(1, 2, 0, 3).reshape(fs, zs).T.copy()
    lin_b = bl.reshape(c5, sh, sw).transpose(1, 2, 0).reshape(1, fs).copy()

    inputs = [lin_w, lin_b]
    plan = []
    blocks = [("block5", c5, c4), ("block4", c4, c3), ("block3", c3, c2),
              ("block2", c2, c1), ("block1", c1, c)]

    # Upsample matrices of the *previous* stage; folded into this stage's matmuls.
    # For the first block the "previous upsample" is the identity.
    Ah_prev = np.eye(sh, dtype=np.float32)
    Bw_prev = np.eye(sw * c5, dtype=np.float32)

    p = k // 2
    for j, (name, cin, cout) in enumerate(blocks):
        Hin, Win = sh * 2 ** j, sw * 2 ** j
        Wc = np.asarray(params[name + "_w"], np.float32)     # (cout, cin, k, k)
        bc = np.asarray(params[name + "_b"], np.float32)

        sa_mats, mb_mats, taps = [], [], []
        for dy in range(k):
            SA = _shift_matrix(Hin, dy - p) @ Ah_prev        # (Hin, H_prev)
            if not SA.any():                                 # tap fully in the zero padding
                continue
            mb_mats.append(Bw_prev @ _conv_band_matrix(Win, cin, cout, Wc[:, :, dy, :]))
            if SA.shape[0] == SA.shape[1] and np.array_equal(
                    SA, np.eye(SA.shape[0], dtype=np.float32)):
                taps.append(None)                            # identity left factor: skip matmul
            else:
                taps.append(len(sa_mats))
                sa_mats.append(SA)
        if sa_mats:
            inputs.append(np.stack(sa_mats, axis=0))         # (n_sa, Hin, H_prev)
        inputs.append(np.stack(mb_mats, axis=0))             # (taps, W_prev*C_prev, Win*cout)
        inputs.append(np.tile(bc, Win).reshape(1, Win * cout))
        plan.append((bool(sa_mats), tuple(taps)))

        Ah_prev = _bilinear_matrix(Hin, 2 * Hin)             # (2H, H)
        Bw_prev = np.kron(_bilinear_matrix(Win, 2 * Win).T,
                          np.eye(cout, dtype=np.float32)).astype(np.float32)

    # Final upsample + 1x1 conv folded into (Ah_last, Bw_last @ M0).
    W0 = np.asarray(params["conv0_w"], np.float32)[:, :, 0, 0]   # (c*outc, c)
    b0 = np.asarray(params["conv0_b"], np.float32)
    M0 = np.kron(np.eye(w, dtype=np.float32), W0.T).astype(np.float32)  # (w*c, w*c*outc)
    inputs += [Ah_prev,
               (Bw_prev @ M0).astype(np.float32),
               np.tile(b0, w).reshape(1, w * c * outc)]
    return [jnp.asarray(a) for a in inputs], tuple(plan)


# ----------------------------------------------------------------------------
# Decoder forward: single pallas_call over the batch grid
# ----------------------------------------------------------------------------
def decoder_forward(z, kernel_inputs, plan, out_size, outc):
    c, h, w = out_size
    B, zs = z.shape
    wc = w * c * outc
    sh = h // 2 ** 5

    z3 = z.reshape(B, 1, zs).astype(jnp.float32)
    inputs = [z3] + list(kernel_inputs)

    in_specs = [pl.BlockSpec((1, 1, zs), lambda i: (i, 0, 0))]
    for a in kernel_inputs:                                  # tiny full-array weight blocks
        in_specs.append(pl.BlockSpec(a.shape, lambda i, _nd=a.ndim: (0,) * _nd))

    out = pl.pallas_call(
        functools.partial(_decoder_kernel, plan=plan, sh=sh),
        out_shape=jax.ShapeDtypeStruct((B, h, wc), jnp.float32),
        grid_spec=pltpu.PrefetchScalarGridSpec(
            num_scalar_prefetch=0,
            grid=(B,),
            in_specs=in_specs,
            out_specs=pl.BlockSpec((1, h, wc), lambda i: (i, 0, 0)),
        ),
        compiler_params=pltpu.CompilerParams(
            dimension_semantics=("parallel",),   # batch samples across TensorCores (v7x)
        ),
    )(*inputs)

    out = out.reshape(B, h, w, c * outc)
    return jnp.transpose(out, (0, 3, 1, 2))                  # back to NCHW (torch layout)


# ----------------------------------------------------------------------------
# Deterministic synthetic parameters in PyTorch shape conventions
# ----------------------------------------------------------------------------
def init_params(key, out_size, channels, zs, outc, k):
    c, h, w = out_size
    c1, c2, c3, c4, c5 = channels
    fs = (h // 2 ** 5) * (w // 2 ** 5) * c5
    keys = jax.random.split(key, 16)

    def wgt(kk, shape, scale=0.1):
        return scale * jax.random.normal(kk, shape, dtype=jnp.float32)

    p = {}
    p["lin_w"] = wgt(keys[0], (fs, zs))                 # Linear.weight (out, in)
    p["lin_b"] = wgt(keys[1], (fs,), 0.01)
    specs = [("block5", c5, c4), ("block4", c4, c3), ("block3", c3, c2),
             ("block2", c2, c1), ("block1", c1, c)]
    ki = 2
    for name, cin, cout in specs:
        p[name + "_w"] = wgt(keys[ki], (cout, cin, k, k)); ki += 1
        p[name + "_b"] = wgt(keys[ki], (cout,), 0.01); ki += 1
    p["conv0_w"] = wgt(keys[ki], (c * outc, c, 1, 1)); ki += 1
    p["conv0_b"] = wgt(keys[ki], (c * outc,), 0.01)
    return p


# ----------------------------------------------------------------------------
if __name__ == "__main__":
    out_size = (3, 32, 32)          # (c, h, w) ; h, w divisible by 2**5
    channels = (4, 4, 8, 8, 16)     # (c1, c2, c3, c4, c5)
    zs, outc, k, batch = 32, 1, 3, 2

    key = jax.random.PRNGKey(0)
    kparams, kz = jax.random.split(key)
    params = init_params(kparams, out_size, channels, zs, outc, k)
    z = jax.random.normal(kz, (batch, zs), dtype=jnp.float32)

    kernel_inputs, plan = prepare_decoder_inputs(params, out_size, channels, outc, k)

    fwd = jax.jit(functools.partial(decoder_forward, plan=plan,
                                    out_size=out_size, outc=outc))
    out = fwd(z, kernel_inputs)
    out = jax.block_until_ready(out)

    expected_shape = (batch, out_size[0] * outc, out_size[1], out_size[2])
    assert out.shape == expected_shape, (out.shape, expected_shape)
    assert bool(jnp.all(jnp.isfinite(out)))
    print("KERNEL_OK")
</pallas_src>

<mosaic_0001>
module attributes {stable_mosaic.version = 11 : i64} {
  func.func @_decoder_kernel(%arg0: i32, %arg1: memref<1x1x32xf32, #tpu.memory_space<vmem>>, %arg2: memref<32x16xf32, #tpu.memory_space<vmem>>, %arg3: memref<1x16xf32, #tpu.memory_space<vmem>>, %arg4: memref<1x16x8xf32, #tpu.memory_space<vmem>>, %arg5: memref<1x8xf32, #tpu.memory_space<vmem>>, %arg6: memref<3x2x1xf32, #tpu.memory_space<vmem>>, %arg7: memref<3x8x16xf32, #tpu.memory_space<vmem>>, %arg8: memref<1x16xf32, #tpu.memory_space<vmem>>, %arg9: memref<3x4x2xf32, #tpu.memory_space<vmem>>, %arg10: memref<3x16x16xf32, #tpu.memory_space<vmem>>, %arg11: memref<1x16xf32, #tpu.memory_space<vmem>>, %arg12: memref<3x8x4xf32, #tpu.memory_space<vmem>>, %arg13: memref<3x16x32xf32, #tpu.memory_space<vmem>>, %arg14: memref<1x32xf32, #tpu.memory_space<vmem>>, %arg15: memref<3x16x8xf32, #tpu.memory_space<vmem>>, %arg16: memref<3x32x48xf32, #tpu.memory_space<vmem>>, %arg17: memref<1x48xf32, #tpu.memory_space<vmem>>, %arg18: memref<32x16xf32, #tpu.memory_space<vmem>>, %arg19: memref<48x96xf32, #tpu.memory_space<vmem>>, %arg20: memref<1x96xf32, #tpu.memory_space<vmem>>, %arg21: memref<1x32x96xf32, #tpu.memory_space<vmem>>) attributes {dimension_semantics = [#tpu.dimension_semantics<parallel>], iteration_bounds = array<i64: 2>, scalar_prefetch = 0 : i64, scratch_operands = 0 : i64, tpu.core_type = #tpu.core_type<tc>, window_params = [{transform_indices = @transform_0, window_bounds = array<i64: 1, 1, 32>}, {pipeline_mode = #tpu.pipeline_mode<synchronous>, transform_indices = @transform_1, window_bounds = array<i64: 32, 16>}, {pipeline_mode = #tpu.pipeline_mode<synchronous>, transform_indices = @transform_2, window_bounds = array<i64: 1, 16>}, {pipeline_mode = #tpu.pipeline_mode<synchronous>, transform_indices = @transform_3, window_bounds = array<i64: 1, 16, 8>}, {pipeline_mode = #tpu.pipeline_mode<synchronous>, transform_indices = @transform_4, window_bounds = array<i64: 1, 8>}, {pipeline_mode = #tpu.pipeline_mode<synchronous>, transform_indices = @transform_5, window_bounds = array<i64: 3, 2, 1>}, {pipeline_mode = #tpu.pipeline_mode<synchronous>, transform_indices = @transform_6, window_bounds = array<i64: 3, 8, 16>}, {pipeline_mode = #tpu.pipeline_mode<synchronous>, transform_indices = @transform_7, window_bounds = array<i64: 1, 16>}, {pipeline_mode = #tpu.pipeline_mode<synchronous>, transform_indices = @transform_8, window_bounds = array<i64: 3, 4, 2>}, {pipeline_mode = #tpu.pipeline_mode<synchronous>, transform_indices = @transform_9, window_bounds = array<i64: 3, 16, 16>}, {pipeline_mode = #tpu.pipeline_mode<synchronous>, transform_indices = @transform_10, window_bounds = array<i64: 1, 16>}, {pipeline_mode = #tpu.pipeline_mode<synchronous>, transform_indices = @transform_11, window_bounds = array<i64: 3, 8, 4>}, {pipeline_mode = #tpu.pipeline_mode<synchronous>, transform_indices = @transform_12, window_bounds = array<i64: 3, 16, 32>}, {pipeline_mode = #tpu.pipeline_mode<synchronous>, transform_indices = @transform_13, window_bounds = array<i64: 1, 32>}, {pipeline_mode = #tpu.pipeline_mode<synchronous>, transform_indices = @transform_14, window_bounds = array<i64: 3, 16, 8>}, {pipeline_mode = #tpu.pipeline_mode<synchronous>, transform_indices = @transform_15, window_bounds = array<i64: 3, 32, 48>}, {pipeline_mode = #tpu.pipeline_mode<synchronous>, transform_indices = @transform_16, window_bounds = array<i64: 1, 48>}, {pipeline_mode = #tpu.pipeline_mode<synchronous>, transform_indices = @transform_17, window_bounds = array<i64: 32, 16>}, {pipeline_mode = #tpu.pipeline_mode<synchronous>, transform_indices = @transform_18, window_bounds = array<i64: 48, 96>}, {pipeline_mode = #tpu.pipeline_mode<synchronous>, transform_indices = @transform_19, window_bounds = array<i64: 1, 96>}, {transform_indices = @transform_20, window_bounds = array<i64: 1, 32, 96>}]} {
    %c0 = arith.constant 0 : index
    %c0_0 = arith.constant 0 : index
    %c0_1 = arith.constant 0 : index
    %0 = vector.load %arg1[%c0, %c0_0, %c0_1] : memref<1x1x32xf32, #tpu.memory_space<vmem>>, vector<1x1x32xf32>
    %1 = vector.shape_cast %0 : vector<1x1x32xf32> to vector<1x32xf32>
    %c0_2 = arith.constant 0 : index
    %c0_3 = arith.constant 0 : index
    %2 = vector.load %arg2[%c0_2, %c0_3] : memref<32x16xf32, #tpu.memory_space<vmem>>, vector<32x16xf32>
    %cst = arith.constant dense<0.000000e+00> : vector<1x16xf32>
    %3 = tpu.matmul %1, %2, %cst {dimension_numbers = #tpu.dot_dimension_numbers<[1], [0], [0], [1], [0, 0, 1, 1], [], []>} : vector<1x32xf32>, vector<32x16xf32>, vector<1x16xf32> -> vector<1x16xf32>
    %c0_4 = arith.constant 0 : index
    %c0_5 = arith.constant 0 : index
    %4 = vector.load %arg3[%c0_4, %c0_5] : memref<1x16xf32, #tpu.memory_space<vmem>>, vector<1x16xf32>
    %5 = arith.addf %3, %4 : vector<1x16xf32>
    %c0_6 = arith.constant 0 : index
    %c0_7 = arith.constant 0 : index
    %c0_8 = arith.constant 0 : index
    %6 = vector.load %arg4[%c0_6, %c0_7, %c0_8] : memref<1x16x8xf32, #tpu.memory_space<vmem>>, vector<1x16x8xf32>
    %7 = vector.shape_cast %6 : vector<1x16x8xf32> to vector<16x8xf32>
    %cst_9 = arith.constant dense<0.000000e+00> : vector<1x8xf32>
    %8 = tpu.matmul %5, %7, %cst_9 {dimension_numbers = #tpu.dot_dimension_numbers<[1], [0], [0], [1], [0, 0, 1, 1], [], []>} : vector<1x16xf32>, vector<16x8xf32>, vector<1x8xf32> -> vector<1x8xf32>
    %c0_10 = arith.constant 0 : index
    %c0_11 = arith.constant 0 : index
    %9 = vector.load %arg5[%c0_10, %c0_11] : memref<1x8xf32, #tpu.memory_space<vmem>>, vector<1x8xf32>
    %10 = arith.addf %8, %9 : vector<1x8xf32>
    %cst_12 = arith.constant 0.000000e+00 : f32
    %11 = vector.broadcast %cst_12 : f32 to vector<1x8xf32>
    %12 = arith.maximumf %10, %11 : vector<1x8xf32>
    %c0_13 = arith.constant 0 : index
    %c0_14 = arith.constant 0 : index
    %c0_15 = arith.constant 0 : index
    %13 = vector.load %arg7[%c0_13, %c0_14, %c0_15] : memref<3x8x16xf32, #tpu.memory_space<vmem>>, vector<1x8x16xf32>
    %14 = vector.shape_cast %13 : vector<1x8x16xf32> to vector<8x16xf32>
    %cst_16 = arith.constant dense<0.000000e+00> : vector<1x16xf32>
    %15 = tpu.matmul %12, %14, %cst_16 {dimension_numbers = #tpu.dot_dimension_numbers<[1], [0], [0], [1], [0, 0, 1, 1], [], []>} : vector<1x8xf32>, vector<8x16xf32>, vector<1x16xf32> -> vector<1x16xf32>
    %c0_17 = arith.constant 0 : index
    %c0_18 = arith.constant 0 : index
    %c0_19 = arith.constant 0 : index
    %16 = vector.load %arg6[%c0_17, %c0_18, %c0_19] : memref<3x2x1xf32, #tpu.memory_space<vmem>>, vector<1x2x1xf32>
    %17 = vector.shape_cast %16 : vector<1x2x1xf32> to vector<2x1xf32>
    %18 = vector.broadcast %17 : vector<2x1xf32> to vector<2x16xf32>
    %19 = vector.broadcast %15 : vector<1x16xf32> to vector<2x16xf32>
    %20 = arith.mulf %18, %19 : vector<2x16xf32>
    %c1 = arith.constant 1 : index
    %c0_20 = arith.constant 0 : index
    %c0_21 = arith.constant 0 : index
    %21 = vector.load %arg7[%c1, %c0_20, %c0_21] : memref<3x8x16xf32, #tpu.memory_space<vmem>>, vector<1x8x16xf32>
    %22 = vector.shape_cast %21 : vector<1x8x16xf32> to vector<8x16xf32>
    %cst_22 = arith.constant dense<0.000000e+00> : vector<1x16xf32>
    %23 = tpu.matmul %12, %22, %cst_22 {dimension_numbers = #tpu.dot_dimension_numbers<[1], [0], [0], [1], [0, 0, 1, 1], [], []>} : vector<1x8xf32>, vector<8x16xf32>, vector<1x16xf32> -> vector<1x16xf32>
    %c1_23 = arith.constant 1 : index
    %c0_24 = arith.constant 0 : index
    %c0_25 = arith.constant 0 : index
    %24 = vector.load %arg6[%c1_23, %c0_24, %c0_25] : memref<3x2x1xf32, #tpu.memory_space<vmem>>, vector<1x2x1xf32>
    %25 = vector.shape_cast %24 : vector<1x2x1xf32> to vector<2x1xf32>
    %26 = vector.broadcast %25 : vector<2x1xf32> to vector<2x16xf32>
    %27 = vector.broadcast %23 : vector<1x16xf32> to vector<2x16xf32>
    %28 = arith.mulf %26, %27 : vector<2x16xf32>
    %29 = arith.addf %20, %28 : vector<2x16xf32>
    %c2 = arith.constant 2 : index
    %c0_26 = arith.constant 0 : index
    %c0_27 = arith.constant 0 : index
    %30 = vector.load %arg7[%c2, %c0_26, %c0_27] : memref<3x8x16xf32, #tpu.memory_space<vmem>>, vector<1x8x16xf32>
    %31 = vector.shape_cast %30 : vector<1x8x16xf32> to vector<8x16xf32>
    %cst_28 = arith.constant dense<0.000000e+00> : vector<1x16xf32>
    %32 = tpu.matmul %12, %31, %cst_28 {dimension_numbers = #tpu.dot_dimension_numbers<[1], [0], [0], [1], [0, 0, 1, 1], [], []>} : vector<1x8xf32>, vector<8x16xf32>, vector<1x16xf32> -> vector<1x16xf32>
    %c2_29 = arith.constant 2 : index
    %c0_30 = arith.constant 0 : index
    %c0_31 = arith.constant 0 : index
    %33 = vector.load %arg6[%c2_29, %c0_30, %c0_31] : memref<3x2x1xf32, #tpu.memory_space<vmem>>, vector<1x2x1xf32>
    %34 = vector.shape_cast %33 : vector<1x2x1xf32> to vector<2x1xf32>
    %35 = vector.broadcast %34 : vector<2x1xf32> to vector<2x16xf32>
    %36 = vector.broadcast %32 : vector<1x16xf32> to vector<2x16xf32>
    %37 = arith.mulf %35, %36 : vector<2x16xf32>
    %38 = arith.addf %29, %37 : vector<2x16xf32>
    %c0_32 = arith.constant 0 : index
    %c0_33 = arith.constant 0 : index
    %39 = vector.load %arg8[%c0_32, %c0_33] : memref<1x16xf32, #tpu.memory_space<vmem>>, vector<1x16xf32>
    %40 = vector.broadcast %39 : vector<1x16xf32> to vector<2x16xf32>
    %41 = arith.addf %38, %40 : vector<2x16xf32>
    %cst_34 = arith.constant 0.000000e+00 : f32
    %42 = vector.broadcast %cst_34 : f32 to vector<2x16xf32>
    %43 = arith.maximumf %41, %42 : vector<2x16xf32>
    %c0_35 = arith.constant 0 : index
    %c0_36 = arith.constant 0 : index
    %c0_37 = arith.constant 0 : index
    %44 = vector.load %arg10[%c0_35, %c0_36, %c0_37] : memref<3x16x16xf32, #tpu.memory_space<vmem>>, vector<1x16x16xf32>
    %45 = vector.shape_cast %44 : vector<1x16x16xf32> to vector<16x16xf32>
    %cst_38 = arith.constant dense<0.000000e+00> : vector<2x16xf32>
    %46 = tpu.matmul %43, %45, %cst_38 {dimension_numbers = #tpu.dot_dimension_numbers<[1], [0], [0], [1], [0, 0, 1, 1], [], []>} : vector<2x16xf32>, vector<16x16xf32>, vector<2x16xf32> -> vector<2x16xf32>
    %c0_39 = arith.constant 0 : index
    %c0_40 = arith.constant 0 : index
    %c0_41 = arith.constant 0 : index
    %47 = vector.load %arg9[%c0_39, %c0_40, %c0_41] : memref<3x4x2xf32, #tpu.memory_space<vmem>>, vector<1x4x2xf32>
    %48 = vector.shape_cast %47 : vector<1x4x2xf32> to vector<4x2xf32>
    %cst_42 = arith.constant dense<0.000000e+00> : vector<4x16xf32>
    %49 = tpu.matmul %48, %46, %cst_42 {dimension_numbers = #tpu.dot_dimension_numbers<[1], [0], [0], [1], [0, 0, 1, 1], [], []>} : vector<4x2xf32>, vector<2x16xf32>, vector<4x16xf32> -> vector<4x16xf32>
    %c1_43 = arith.constant 1 : index
    %c0_44 = arith.constant 0 : index
    %c0_45 = arith.constant 0 : index
    %50 = vector.load %arg10[%c1_43, %c0_44, %c0_45] : memref<3x16x16xf32, #tpu.memory_space<vmem>>, vector<1x16x16xf32>
    %51 = vector.shape_cast %50 : vector<1x16x16xf32> to vector<16x16xf32>
    %cst_46 = arith.constant dense<0.000000e+00> : vector<2x16xf32>
    %52 = tpu.matmul %43, %51, %cst_46 {dimension_numbers = #tpu.dot_dimension_numbers<[1], [0], [0], [1], [0, 0, 1, 1], [], []>} : vector<2x16xf32>, vector<16x16xf32>, vector<2x16xf32> -> vector<2x16xf32>
    %c1_47 = arith.constant 1 : index
    %c0_48 = arith.constant 0 : index
    %c0_49 = arith.constant 0 : index
    %53 = vector.load %arg9[%c1_47, %c0_48, %c0_49] : memref<3x4x2xf32, #tpu.memory_space<vmem>>, vector<1x4x2xf32>
    %54 = vector.shape_cast %53 : vector<1x4x2xf32> to vector<4x2xf32>
    %cst_50 = arith.constant dense<0.000000e+00> : vector<4x16xf32>
    %55 = tpu.matmul %54, %52, %cst_50 {dimension_numbers = #tpu.dot_dimension_numbers<[1], [0], [0], [1], [0, 0, 1, 1], [], []>} : vector<4x2xf32>, vector<2x16xf32>, vector<4x16xf32> -> vector<4x16xf32>
    %56 = arith.addf %49, %55 : vector<4x16xf32>
    %c2_51 = arith.constant 2 : index
    %c0_52 = arith.constant 0 : index
    %c0_53 = arith.constant 0 : index
    %57 = vector.load %arg10[%c2_51, %c0_52, %c0_53] : memref<3x16x16xf32, #tpu.memory_space<vmem>>, vector<1x16x16xf32>
    %58 = vector.shape_cast %57 : vector<1x16x16xf32> to vector<16x16xf32>
    %cst_54 = arith.constant dense<0.000000e+00> : vector<2x16xf32>
    %59 = tpu.matmul %43, %58, %cst_54 {dimension_numbers = #tpu.dot_dimension_numbers<[1], [0], [0], [1], [0, 0, 1, 1], [], []>} : vector<2x16xf32>, vector<16x16xf32>, vector<2x16xf32> -> vector<2x16xf32>
    %c2_55 = arith.constant 2 : index
    %c0_56 = arith.constant 0 : index
    %c0_57 = arith.constant 0 : index
    %60 = vector.load %arg9[%c2_55, %c0_56, %c0_57] : memref<3x4x2xf32, #tpu.memory_space<vmem>>, vector<1x4x2xf32>
    %61 = vector.shape_cast %60 : vector<1x4x2xf32> to vector<4x2xf32>
    %cst_58 = arith.constant dense<0.000000e+00> : vector<4x16xf32>
    %62 = tpu.matmul %61, %59, %cst_58 {dimension_numbers = #tpu.dot_dimension_numbers<[1], [0], [0], [1], [0, 0, 1, 1], [], []>} : vector<4x2xf32>, vector<2x16xf32>, vector<4x16xf32> -> vector<4x16xf32>
    %63 = arith.addf %56, %62 : vector<4x16xf32>
    %c0_59 = arith.constant 0 : index
    %c0_60 = arith.constant 0 : index
    %64 = vector.load %arg11[%c0_59, %c0_60] : memref<1x16xf32, #tpu.memory_space<vmem>>, vector<1x16xf32>
    %65 = vector.broadcast %64 : vector<1x16xf32> to vector<4x16xf32>
    %66 = arith.addf %63, %65 : vector<4x16xf32>
    %cst_61 = arith.constant 0.000000e+00 : f32
    %67 = vector.broadcast %cst_61 : f32 to vector<4x16xf32>
    %68 = arith.maximumf %66, %67 : vector<4x16xf32>
    %c0_62 = arith.constant 0 : index
    %c0_63 = arith.constant 0 : index
    %c0_64 = arith.constant 0 : index
    %69 = vector.load %arg13[%c0_62, %c0_63, %c0_64] : memref<3x16x32xf32, #tpu.memory_space<vmem>>, vector<1x16x32xf32>
    %70 = vector.shape_cast %69 : vector<1x16x32xf32> to vector<16x32xf32>
    %cst_65 = arith.constant dense<0.000000e+00> : vector<4x32xf32>
    %71 = tpu.matmul %68, %70, %cst_65 {dimension_numbers = #tpu.dot_dimension_numbers<[1], [0], [0], [1], [0, 0, 1, 1], [], []>} : vector<4x16xf32>, vector<16x32xf32>, vector<4x32xf32> -> vector<4x32xf32>
    %c0_66 = arith.constant 0 : index
    %c0_67 = arith.constant 0 : index
    %c0_68 = arith.constant 0 : index
    %72 = vector.load %arg12[%c0_66, %c0_67, %c0_68] : memref<3x8x4xf32, #tpu.memory_space<vmem>>, vector<1x8x4xf32>
    %73 = vector.shape_cast %72 : vector<1x8x4xf32> to vector<8x4xf32>
    %cst_69 = arith.constant dense<0.000000e+00> : vector<8x32xf32>
    %74 = tpu.matmul %73, %71, %cst_69 {dimension_numbers = #tpu.dot_dimension_numbers<[1], [0], [0], [1], [0, 0, 1, 1], [], []>} : vector<8x4xf32>, vector<4x32xf32>, vector<8x32xf32> -> vector<8x32xf32>
    %c1_70 = arith.constant 1 : index
    %c0_71 = arith.constant 0 : index
    %c0_72 = arith.constant 0 : index
    %75 = vector.load %arg13[%c1_70, %c0_71, %c0_72] : memref<3x16x32xf32, #tpu.memory_space<vmem>>, vector<1x16x32xf32>
    %76 = vector.shape_cast %75 : vector<1x16x32xf32> to vector<16x32xf32>
    %cst_73 = arith.constant dense<0.000000e+00> : vector<4x32xf32>
    %77 = tpu.matmul %68, %76, %cst_73 {dimension_numbers = #tpu.dot_dimension_numbers<[1], [0], [0], [1], [0, 0, 1, 1], [], []>} : vector<4x16xf32>, vector<16x32xf32>, vector<4x32xf32> -> vector<4x32xf32>
    %c1_74 = arith.constant 1 : index
    %c0_75 = arith.constant 0 : index
    %c0_76 = arith.constant 0 : index
    %78 = vector.load %arg12[%c1_74, %c0_75, %c0_76] : memref<3x8x4xf32, #tpu.memory_space<vmem>>, vector<1x8x4xf32>
    %79 = vector.shape_cast %78 : vector<1x8x4xf32> to vector<8x4xf32>
    %cst_77 = arith.constant dense<0.000000e+00> : vector<8x32xf32>
    %80 = tpu.matmul %79, %77, %cst_77 {dimension_numbers = #tpu.dot_dimension_numbers<[1], [0], [0], [1], [0, 0, 1, 1], [], []>} : vector<8x4xf32>, vector<4x32xf32>, vector<8x32xf32> -> vector<8x32xf32>
    %81 = arith.addf %74, %80 : vector<8x32xf32>
    %c2_78 = arith.constant 2 : index
    %c0_79 = arith.constant 0 : index
    %c0_80 = arith.constant 0 : index
    %82 = vector.load %arg13[%c2_78, %c0_79, %c0_80] : memref<3x16x32xf32, #tpu.memory_space<vmem>>, vector<1x16x32xf32>
    %83 = vector.shape_cast %82 : vector<1x16x32xf32> to vector<16x32xf32>
    %cst_81 = arith.constant dense<0.000000e+00> : vector<4x32xf32>
    %84 = tpu.matmul %68, %83, %cst_81 {dimension_numbers = #tpu.dot_dimension_numbers<[1], [0], [0], [1], [0, 0, 1, 1], [], []>} : vector<4x16xf32>, vector<16x32xf32>, vector<4x32xf32> -> vector<4x32xf32>
    %c2_82 = arith.constant 2 : index
    %c0_83 = arith.constant 0 : index
    %c0_84 = arith.constant 0 : index
    %85 = vector.load %arg12[%c2_82, %c0_83, %c0_84] : memref<3x8x4xf32, #tpu.memory_space<vmem>>, vector<1x8x4xf32>
    %86 = vector.shape_cast %85 : vector<1x8x4xf32> to vector<8x4xf32>
    %cst_85 = arith.constant dense<0.000000e+00> : vector<8x32xf32>
    %87 = tpu.matmul %86, %84, %cst_85 {dimension_numbers = #tpu.dot_dimension_numbers<[1], [0], [0], [1], [0, 0, 1, 1], [], []>} : vector<8x4xf32>, vector<4x32xf32>, vector<8x32xf32> -> vector<8x32xf32>
    %88 = arith.addf %81, %87 : vector<8x32xf32>
    %c0_86 = arith.constant 0 : index
    %c0_87 = arith.constant 0 : index
    %89 = vector.load %arg14[%c0_86, %c0_87] : memref<1x32xf32, #tpu.memory_space<vmem>>, vector<1x32xf32>
    %90 = vector.broadcast %89 : vector<1x32xf32> to vector<8x32xf32>
    %91 = arith.addf %88, %90 : vector<8x32xf32>
    %cst_88 = arith.constant 0.000000e+00 : f32
    %92 = vector.broadcast %cst_88 : f32 to vector<8x32xf32>
    %93 = arith.maximumf %91, %92 : vector<8x32xf32>
    %c0_89 = arith.constant 0 : index
    %c0_90 = arith.constant 0 : index
    %c0_91 = arith.constant 0 : index
    %94 = vector.load %arg16[%c0_89, %c0_90, %c0_91] : memref<3x32x48xf32, #tpu.memory_space<vmem>>, vector<1x32x48xf32>
    %95 = vector.shape_cast %94 : vector<1x32x48xf32> to vector<32x48xf32>
    %cst_92 = arith.constant dense<0.000000e+00> : vector<8x48xf32>
    %96 = tpu.matmul %93, %95, %cst_92 {dimension_numbers = #tpu.dot_dimension_numbers<[1], [0], [0], [1], [0, 0, 1, 1], [], []>} : vector<8x32xf32>, vector<32x48xf32>, vector<8x48xf32> -> vector<8x48xf32>
    %c0_93 = arith.constant 0 : index
    %c0_94 = arith.constant 0 : index
    %c0_95 = arith.constant 0 : index
    %97 = vector.load %arg15[%c0_93, %c0_94, %c0_95] : memref<3x16x8xf32, #tpu.memory_space<vmem>>, vector<1x16x8xf32>
    %98 = vector.shape_cast %97 : vector<1x16x8xf32> to vector<16x8xf32>
    %cst_96 = arith.constant dense<0.000000e+00> : vector<16x48xf32>
    %99 = tpu.matmul %98, %96, %cst_96 {dimension_numbers = #tpu.dot_dimension_numbers<[1], [0], [0], [1], [0, 0, 1, 1], [], []>} : vector<16x8xf32>, vector<8x48xf32>, vector<16x48xf32> -> vector<16x48xf32>
    %c1_97 = arith.constant 1 : index
    %c0_98 = arith.constant 0 : index
    %c0_99 = arith.constant 0 : index
    %100 = vector.load %arg16[%c1_97, %c0_98, %c0_99] : memref<3x32x48xf32, #tpu.memory_space<vmem>>, vector<1x32x48xf32>
    %101 = vector.shape_cast %100 : vector<1x32x48xf32> to vector<32x48xf32>
    %cst_100 = arith.constant dense<0.000000e+00> : vector<8x48xf32>
    %102 = tpu.matmul %93, %101, %cst_100 {dimension_numbers = #tpu.dot_dimension_numbers<[1], [0], [0], [1], [0, 0, 1, 1], [], []>} : vector<8x32xf32>, vector<32x48xf32>, vector<8x48xf32> -> vector<8x48xf32>
    %c1_101 = arith.constant 1 : index
    %c0_102 = arith.constant 0 : index
    %c0_103 = arith.constant 0 : index
    %103 = vector.load %arg15[%c1_101, %c0_102, %c0_103] : memref<3x16x8xf32, #tpu.memory_space<vmem>>, vector<1x16x8xf32>
    %104 = vector.shape_cast %103 : vector<1x16x8xf32> to vector<16x8xf32>
    %cst_104 = arith.constant dense<0.000000e+00> : vector<16x48xf32>
    %105 = tpu.matmul %104, %102, %cst_104 {dimension_numbers = #tpu.dot_dimension_numbers<[1], [0], [0], [1], [0, 0, 1, 1], [], []>} : vector<16x8xf32>, vector<8x48xf32>, vector<16x48xf32> -> vector<16x48xf32>
    %106 = arith.addf %99, %105 : vector<16x48xf32>
    %c2_105 = arith.constant 2 : index
    %c0_106 = arith.constant 0 : index
    %c0_107 = arith.constant 0 : index
    %107 = vector.load %arg16[%c2_105, %c0_106, %c0_107] : memref<3x32x48xf32, #tpu.memory_space<vmem>>, vector<1x32x48xf32>
    %108 = vector.shape_cast %107 : vector<1x32x48xf32> to vector<32x48xf32>
    %cst_108 = arith.constant dense<0.000000e+00> : vector<8x48xf32>
    %109 = tpu.matmul %93, %108, %cst_108 {dimension_numbers = #tpu.dot_dimension_numbers<[1], [0], [0], [1], [0, 0, 1, 1], [], []>} : vector<8x32xf32>, vector<32x48xf32>, vector<8x48xf32> -> vector<8x48xf32>
    %c2_109 = arith.constant 2 : index
    %c0_110 = arith.constant 0 : index
    %c0_111 = arith.constant 0 : index
    %110 = vector.load %arg15[%c2_109, %c0_110, %c0_111] : memref<3x16x8xf32, #tpu.memory_space<vmem>>, vector<1x16x8xf32>
    %111 = vector.shape_cast %110 : vector<1x16x8xf32> to vector<16x8xf32>
    %cst_112 = arith.constant dense<0.000000e+00> : vector<16x48xf32>
    %112 = tpu.matmul %111, %109, %cst_112 {dimension_numbers = #tpu.dot_dimension_numbers<[1], [0], [0], [1], [0, 0, 1, 1], [], []>} : vector<16x8xf32>, vector<8x48xf32>, vector<16x48xf32> -> vector<16x48xf32>
    %113 = arith.addf %106, %112 : vector<16x48xf32>
    %c0_113 = arith.constant 0 : index
    %c0_114 = arith.constant 0 : index
    %114 = vector.load %arg17[%c0_113, %c0_114] : memref<1x48xf32, #tpu.memory_space<vmem>>, vector<1x48xf32>
    %115 = vector.broadcast %114 : vector<1x48xf32> to vector<16x48xf32>
    %116 = arith.addf %113, %115 : vector<16x48xf32>
    %cst_115 = arith.constant 0.000000e+00 : f32
    %117 = vector.broadcast %cst_115 : f32 to vector<16x48xf32>
    %118 = arith.maximumf %116, %117 : vector<16x48xf32>
    %c0_116 = arith.constant 0 : index
    %c0_117 = arith.constant 0 : index
    %119 = vector.load %arg18[%c0_116, %c0_117] : memref<32x16xf32, #tpu.memory_space<vmem>>, vector<32x16xf32>
    %c0_118 = arith.constant 0 : index
    %c0_119 = arith.constant 0 : index
    %120 = vector.load %arg19[%c0_118, %c0_119] : memref<48x96xf32, #tpu.memory_space<vmem>>, vector<48x96xf32>
    %cst_120 = arith.constant dense<0.000000e+00> : vector<16x96xf32>
    %121 = tpu.matmul %118, %120, %cst_120 {dimension_numbers = #tpu.dot_dimension_numbers<[1], [0], [0], [1], [0, 0, 1, 1], [], []>} : vector<16x48xf32>, vector<48x96xf32>, vector<16x96xf32> -> vector<16x96xf32>
    %cst_121 = arith.constant dense<0.000000e+00> : vector<32x96xf32>
    %122 = tpu.matmul %119, %121, %cst_121 {dimension_numbers = #tpu.dot_dimension_numbers<[1], [0], [0], [1], [0, 0, 1, 1], [], []>} : vector<32x16xf32>, vector<16x96xf32>, vector<32x96xf32> -> vector<32x96xf32>
    %c0_122 = arith.constant 0 : index
    %c0_123 = arith.constant 0 : index
    %123 = vector.load %arg20[%c0_122, %c0_123] : memref<1x96xf32, #tpu.memory_space<vmem>>, vector<1x96xf32>
    %124 = vector.broadcast %123 : vector<1x96xf32> to vector<32x96xf32>
    %125 = arith.addf %122, %124 : vector<32x96xf32>
    %c0_124 = arith.constant 0 : index
    %c0_125 = arith.constant 0 : index
    %c0_126 = arith.constant 0 : index
    %126 = vector.load %arg21[%c0_124, %c0_125, %c0_126] : memref<1x32x96xf32, #tpu.memory_space<vmem>>, vector<1x32x96xf32>
    %127 = vector.shape_cast %126 : vector<1x32x96xf32> to vector<32x96xf32>
    %128 = vector.shape_cast %125 : vector<32x96xf32> to vector<1x32x96xf32>
    tpu.vector_store %arg21[%c0_124, %c0_125, %c0_126], %128 {strides = array<i32>} : memref<1x32x96xf32, #tpu.memory_space<vmem>>, vector<1x32x96xf32>,
    return
  }
  func.func @transform_0(%arg0: i32) -> (i32, i32, i32) {
    %c0_i32 = arith.constant 0 : i32
    %c0_i32_0 = arith.constant 0 : i32
    %c0_i32_1 = arith.constant 0 : i32
    return %arg0, %c0_i32, %c0_i32_0 : i32, i32, i32
  }
  func.func @transform_1(%arg0: i32) -> (i32, i32) {
    %c0_i32 = arith.constant 0 : i32
    %c0_i32_0 = arith.constant 0 : i32
    %c0_i32_1 = arith.constant 0 : i32
    return %c0_i32, %c0_i32_0 : i32, i32
  }
  func.func @transform_2(%arg0: i32) -> (i32, i32) {
    %c0_i32 = arith.constant 0 : i32
    %c0_i32_0 = arith.constant 0 : i32
    %c0_i32_1 = arith.constant 0 : i32
    return %c0_i32, %c0_i32_0 : i32, i32
  }
  func.func @transform_3(%arg0: i32) -> (i32, i32, i32) {
    %c0_i32 = arith.constant 0 : i32
    %c0_i32_0 = arith.constant 0 : i32
    %c0_i32_1 = arith.constant 0 : i32
    %c0_i32_2 = arith.constant 0 : i32
    return %c0_i32, %c0_i32_0, %c0_i32_1 : i32, i32, i32
  }
  func.func @transform_4(%arg0: i32) -> (i32, i32) {
    %c0_i32 = arith.constant 0 : i32
    %c0_i32_0 = arith.constant 0 : i32
    %c0_i32_1 = arith.constant 0 : i32
    return %c0_i32, %c0_i32_0 : i32, i32
  }
  func.func @transform_5(%arg0: i32) -> (i32, i32, i32) {
    %c0_i32 = arith.constant 0 : i32
    %c0_i32_0 = arith.constant 0 : i32
    %c0_i32_1 = arith.constant 0 : i32
    %c0_i32_2 = arith.constant 0 : i32
    return %c0_i32, %c0_i32_0, %c0_i32_1 : i32, i32, i32
  }
  func.func @transform_6(%arg0: i32) -> (i32, i32, i32) {
    %c0_i32 = arith.constant 0 : i32
    %c0_i32_0 = arith.constant 0 : i32
    %c0_i32_1 = arith.constant 0 : i32
    %c0_i32_2 = arith.constant 0 : i32
    return %c0_i32, %c0_i32_0, %c0_i32_1 : i32, i32, i32
  }
  func.func @transform_7(%arg0: i32) -> (i32, i32) {
    %c0_i32 = arith.constant 0 : i32
    %c0_i32_0 = arith.constant 0 : i32
    %c0_i32_1 = arith.constant 0 : i32
    return %c0_i32, %c0_i32_0 : i32, i32
  }
  func.func @transform_8(%arg0: i32) -> (i32, i32, i32) {
    %c0_i32 = arith.constant 0 : i32
    %c0_i32_0 = arith.constant 0 : i32
    %c0_i32_1 = arith.constant 0 : i32
    %c0_i32_2 = arith.constant 0 : i32
    return %c0_i32, %c0_i32_0, %c0_i32_1 : i32, i32, i32
  }
  func.func @transform_9(%arg0: i32) -> (i32, i32, i32) {
    %c0_i32 = arith.constant 0 : i32
    %c0_i32_0 = arith.constant 0 : i32
    %c0_i32_1 = arith.constant 0 : i32
    %c0_i32_2 = arith.constant 0 : i32
    return %c0_i32, %c0_i32_0, %c0_i32_1 : i32, i32, i32
  }
  func.func @transform_10(%arg0: i32) -> (i32, i32) {
    %c0_i32 = arith.constant 0 : i32
    %c0_i32_0 = arith.constant 0 : i32
    %c0_i32_1 = arith.constant 0 : i32
    return %c0_i32, %c0_i32_0 : i32, i32
  }
  func.func @transform_11(%arg0: i32) -> (i32, i32, i32) {
    %c0_i32 = arith.constant 0 : i32
    %c0_i32_0 = arith.constant 0 : i32
    %c0_i32_1 = arith.constant 0 : i32
    %c0_i32_2 = arith.constant 0 : i32
    return %c0_i32, %c0_i32_0, %c0_i32_1 : i32, i32, i32
  }
  func.func @transform_12(%arg0: i32) -> (i32, i32, i32) {
    %c0_i32 = arith.constant 0 : i32
    %c0_i32_0 = arith.constant 0 : i32
    %c0_i32_1 = arith.constant 0 : i32
    %c0_i32_2 = arith.constant 0 : i32
    return %c0_i32, %c0_i32_0, %c0_i32_1 : i32, i32, i32
  }
  func.func @transform_13(%arg0: i32) -> (i32, i32) {
    %c0_i32 = arith.constant 0 : i32
    %c0_i32_0 = arith.constant 0 : i32
    %c0_i32_1 = arith.constant 0 : i32
    return %c0_i32, %c0_i32_0 : i32, i32
  }
  func.func @transform_14(%arg0: i32) -> (i32, i32, i32) {
    %c0_i32 = arith.constant 0 : i32
    %c0_i32_0 = arith.constant 0 : i32
    %c0_i32_1 = arith.constant 0 : i32
    %c0_i32_2 = arith.constant 0 : i32
    return %c0_i32, %c0_i32_0, %c0_i32_1 : i32, i32, i32
  }
  func.func @transform_15(%arg0: i32) -> (i32, i32, i32) {
    %c0_i32 = arith.constant 0 : i32
    %c0_i32_0 = arith.constant 0 : i32
    %c0_i32_1 = arith.constant 0 : i32
    %c0_i32_2 = arith.constant 0 : i32
    return %c0_i32, %c0_i32_0, %c0_i32_1 : i32, i32, i32
  }
  func.func @transform_16(%arg0: i32) -> (i32, i32) {
    %c0_i32 = arith.constant 0 : i32
    %c0_i32_0 = arith.constant 0 : i32
    %c0_i32_1 = arith.constant 0 : i32
    return %c0_i32, %c0_i32_0 : i32, i32
  }
  func.func @transform_17(%arg0: i32) -> (i32, i32) {
    %c0_i32 = arith.constant 0 : i32
    %c0_i32_0 = arith.constant 0 : i32
    %c0_i32_1 = arith.constant 0 : i32
    return %c0_i32, %c0_i32_0 : i32, i32
  }
  func.func @transform_18(%arg0: i32) -> (i32, i32) {
    %c0_i32 = arith.constant 0 : i32
    %c0_i32_0 = arith.constant 0 : i32
    %c0_i32_1 = arith.constant 0 : i32
    return %c0_i32, %c0_i32_0 : i32, i32
  }
  func.func @transform_19(%arg0: i32) -> (i32, i32) {
    %c0_i32 = arith.constant 0 : i32
    %c0_i32_0 = arith.constant 0 : i32
    %c0_i32_1 = arith.constant 0 : i32
    return %c0_i32, %c0_i32_0 : i32, i32
  }
  func.func @transform_20(%arg0: i32) -> (i32, i32, i32) {
    %c0_i32 = arith.constant 0 : i32
    %c0_i32_0 = arith.constant 0 : i32
    %c0_i32_1 = arith.constant 0 : i32
    return %arg0, %c0_i32, %c0_i32_0 : i32, i32, i32
  }
}

</mosaic_0001>

<bundles_post_ra>
// kernel: decoder_forward.1
= control target key start
LH: loop header
LB: loop body
LE: loop exit
PB: predicated region body
PF: predicated region fallthrough
CT: control target
= control target key end

     0   :  { %s4034_s0 = inlined_call_operand.hbm [shape: f32[2,1,32], index: 0, kind: input, shape index: {}]   ;;  %s4035_s1 = inlined_call_operand.vmem [shape: f32[32,16], index: 1, kind: input, shape index: {}]   ;;  %s4036_s2 = inlined_call_operand.hbm [shape: f32[1,16], index: 2, kind: input, shape index: {}]   ;;  %s4037_s3 = inlined_call_operand.vmem [shape: f32[1,16,8], index: 3, kind: input, shape index: {}]   ;;  %s4038_s4 = inlined_call_operand.hbm [shape: f32[1,8], index: 4, kind: input, shape index: {}]   ;;  %s4039_s5 = inlined_call_operand.vmem [shape: f32[3,2,1], index: 5, kind: input, shape index: {}]   ;;  %s4040_s6 = inlined_call_operand.vmem [shape: f32[3,8,16], index: 6, kind: input, shape index: {}]   ;;  %s4041_s7 = inlined_call_operand.vmem [shape: f32[1,16], index: 7, kind: input, shape index: {}]   ;;  %s4042_s8 = inlined_call_operand.vmem [shape: f32[3,4,2], index: 8, kind: input, shape index: {}]   ;;  %s4043_s9 = inlined_call_operand.vmem [shape: f32[3,16,16], index: 9, kind: input, shape index: {}]   ;;  %s4044_s10 = inlined_call_operand.hbm [shape: f32[1,16], index: 10, kind: input, shape index: {}]   ;;  %s4045_s11 = inlined_call_operand.vmem [shape: f32[3,8,4], index: 11, kind: input, shape index: {}]   ;;  %s4046_s12 = inlined_call_operand.vmem [shape: f32[3,16,32], index: 12, kind: input, shape index: {}]   ;;  %s4047_s13 = inlined_call_operand.hbm [shape: f32[1,32], index: 13, kind: input, shape index: {}]   ;;  %s4048_s14 = inlined_call_operand.vmem [shape: f32[3,16,8], index: 14, kind: input, shape index: {}]   ;;  %s4049_s15 = inlined_call_operand.vmem [shape: f32[3,32,48], index: 15, kind: input, shape index: {}]   ;;  %s4050_s16 = inlined_call_operand.vmem [shape: f32[1,48], index: 16, kind: input, shape index: {}]   ;;  %s4051_s17 = inlined_call_operand.vmem [shape: f32[32,16], index: 17, kind: input, shape index: {}]   ;;  %s4052_s18 = inlined_call_operand.vmem [shape: f32[48,96], index: 18, kind: input, shape index: {}]   ;;  %s4053_s19 = inlined_call_operand.vmem [shape: f32[1,96], index: 19, kind: input, shape index: {}]   ;;  %s4054_s20 = inlined_call_operand.vmem [shape: f32[2,32,96], index: 20, kind: output, shape index: {}]  }
   0x1   :  { %4064 = sst [smem:[#allocation16_spill]] %s4034_s0 }
   0x2   :  { %4065 = sst [smem:[#allocation17_spill]] %s4035_s1 }
   0x3   :  { %4066 = sst [smem:[#allocation18_spill]] %s4036_s2 }
   0x4   :  { %4067 = sst [smem:[#allocation19_spill]] %s4037_s3 }
   0x5   :  { %4068 = sst [smem:[#allocation20_spill]] %s4038_s4 }
   0x6   :  { %4069 = sst [smem:[#allocation21_spill]] %s4044_s10 }
   0x7   :  { %4070 = sst [smem:[#allocation22_spill]] %s4047_s13 }
   0x8   :  { %4071 = sst [smem:[#allocation23_spill]] %s4053_s19 }
   0x9   :  { %4072 = sst [smem:[#allocation24_spill]] %s4054_s20 }
   0xa   :  { %25 = vsyncpa [#allocation3], 0 }
   0xb   :  { %27 = vsyncpa [#allocation3 + $0x1], 0 }
   0xc   :  { %28 = vsyncpa [#allocation5], 0 }
   0xd   :  { %29 = vsyncpa [#allocation8], 0  ;;  %s3566_s1 = smov 0   ;;  %s3568_s22 = smov 0  }
   0xe   :  { %s3570_s23 = smov 0   ;;  %s3572_s24 = smov 0  }
   0xf LB: > { %4073 = sst [smem:[#allocation13_spill]] %s3447_s23  ;;  %s3453_s2 = smov [#allocation4]   ;;  %s3451_s24 = sphi %s3572_s24, %s4096_s24   ;;  %s3447_s23 = sphi %s3570_s23, %s4098_s23   ;;  %s3443_s22 = sphi %s3568_s22, %s4100_s22   ;;  %s3439_s1 = sphi %s3566_s1, %s4099_s1  }
  0x10   : > { %s507_s25 = sshll.u32 %s3453_s2, 4  ;;  %s3587_s3 = sadd.s32 4294967295, %s3451_s24   ;;  %s508_s25 = int_to_ptr.vmem [resolvable:$true] %s507_s25 }
  0x11   : > { %p2844_p0 = scmp.ge.s32.totalorder %s3451_s24, 1  ;;  %p4058_p1 = scmp.eq.s32.totalorder %s3587_s3, 0 }
  0x12   : > { %p491_p2 = scmp.lt.s32.totalorder %s3451_s24, 3  ;;  %s3454_s27 = smov [#allocation7]  }
  0x13   : > { %s547_s28 = sshll.u32 %s3454_s27, 4  ;;  %s3455_s4 = smov [#allocation6]   ;;  %s3598_s28 = int_to_ptr.vmem [resolvable:$true] %s547_s28 }
  0x14   : > { %p3592_p3 = pnand %p2844_p0, %p491_p2  ;;  %s521_s29 = sshll.u32 %s3455_s4, 4  ;;  %s3606_s29 = int_to_ptr.vmem [resolvable:$true] %s521_s29 }
  0x15   : > { %s3456_s0 = smov [#allocation9]   ;;  %s3288_s2 = scalar_lea.vmem %s508_s25, 16 }
  0x16   : > { %s4074_s26 = scalar_select %p3592_p3, 1, 0 }
  0x17   : > { %p3210_p4 = pneg %p3592_p3  ;;  %s3608_s21 = sshll.u32 %s3456_s0, 4  ;;  %s565_s21 = int_to_ptr.vmem [resolvable:$true] %s3608_s21 }
  0x18   : > { %p3289_p7 = scmp.ne.s32.totalorder %s508_s25, %s3288_s2  ;;  %s3295_s27 = scalar_lea.vmem %s508_s25, 32 }
  0x19   : > { %p3602_p5 = pnand %p3210_p4, %p4058_p1  ;;  %p3296_p10 = scmp.lt.s32.totalorder %s508_s25, %s508_s25 }
  0x1a   : > { %p3297_p11 = scmp.lt.s32.totalorder %s3295_s27, %s3288_s2 }
  0x1b   : > { %p3279_p6 = pneg %p3602_p5 }
  0x1c   : > { %p3298_p12 = por %p3297_p11, %p3296_p10 }
  0x1d   : > { %p3291_p8 = pnand %p3289_p7, %p3279_p6 }
  0x1f   : > { %p3292_p9 = pneg %p3291_p8 }
  0x21   : > { %p3299_p13 = pnand %p3298_p12, %p3292_p9 }
  0x23   : > { %3302 = shalt.err (!%p3299_p13)
}
  0x24   : > { %s4076_s0 = sld [smem:[#allocation18_spill]]  ;;  %s3314_s19 = scalar_lea.vmem %s3598_s28, 16 }
  0x25   : > { %p3315_p0 = scmp.ne.s32.totalorder %s3598_s28, %s3314_s19  ;;  %s3321_s2 = scalar_lea.vmem %s3598_s28, 32 }
  0x26   : > { %p3322_p7 = scmp.lt.s32.totalorder %s3598_s28, %s3598_s28  ;;  %p3323_p8 = scmp.lt.s32.totalorder %s3321_s2, %s3314_s19 }
  0x27   : > { %p3317_p2 = pnand %p3315_p0, %p3279_p6 }
  0x28   : > { %p3324_p9 = por %p3323_p8, %p3322_p7 }
  0x29   : > { %p3318_p4 = pneg %p3317_p2 }
  0x2a   : > { %3213 = dma.hbm_to_vmem [thread:$0]  (!%p3602_p5), %s4076_s0, 16, %s508_s25, [#allocation5]  }
  0x2b   : > { %p3325_p10 = pnand %p3324_p9, %p3318_p4 }
  0x2d   : > { %3328 = shalt.err (!%p3325_p10)
}
  0x2e   : > { %s4077_s10 = sld [smem:[#allocation21_spill]]  ;;  %s3340_s25 = scalar_lea.vmem %s3606_s29, 16 }
  0x2f   : > { %p3341_p11 = scmp.ne.s32.totalorder %s3606_s29, %s3340_s25  ;;  %s3347_s19 = scalar_lea.vmem %s3606_s29, 32 }
  0x30   : > { %p3348_p0 = scmp.lt.s32.totalorder %s3606_s29, %s3606_s29  ;;  %p3349_p2 = scmp.lt.s32.totalorder %s3347_s19, %s3340_s25 }
  0x31   : > { %p3343_p12 = pnand %p3341_p11, %p3279_p6 }
  0x32   : > { %p3350_p4 = por %p3349_p2, %p3348_p0 }
  0x33   : > { %p3344_p13 = pneg %p3343_p12 }
  0x34   : > { %3219 = dma.hbm_to_vmem [thread:$0]  (!%p3602_p5), %s4077_s10, 16, %s3598_s28, [#allocation8]  }
  0x35   : > { %p3351_p7 = pnand %p3350_p4, %p3344_p13 }
  0x37   : > { %3354 = shalt.err (!%p3351_p7)
}
  0x38   : > { %s4078_s2 = sld [smem:[#allocation20_spill]]  ;;  %s3366_s28 = scalar_lea.vmem %s565_s21, 16 }
  0x39   : > { %p3367_p8 = scmp.ne.s32.totalorder %s565_s21, %s3366_s28  ;;  %s3373_s20 = scalar_lea.vmem %s565_s21, 32 }
  0x3a   : > { %p3374_p11 = scmp.lt.s32.totalorder %s565_s21, %s565_s21  ;;  %p3375_p12 = scmp.lt.s32.totalorder %s3373_s20, %s3366_s28 }
  0x3b   : > { %p3369_p9 = pnand %p3367_p8, %p3279_p6 }
  0x3c   : > { %p3376_p13 = por %p3375_p12, %p3374_p11 }
  0x3d   : > { %p3370_p10 = pneg %p3369_p9 }
  0x3e   : > { %3216 = dma.hbm_to_vmem [thread:$0]  (!%p3602_p5), %s4078_s2, 16, %s3606_s29, [#allocation5]  }
  0x3f   : > { %p3377_p0 = pnand %p3376_p13, %p3370_p10 }
  0x41   : > { %3380 = shalt.err (!%p3377_p0)
}
  0x42   : > { %s4079_s13 = sld [smem:[#allocation22_spill]]  ;;  %s3658_s29 = sadd.s32 1, %s3451_s24  }
  0x43   : > { %4080 = sst [smem:[#allocation14_spill]] %s3658_s29  ;;  %s42_s30 = sadd.s32 1, %s3447_s23 }
  0x44   : > { %s39_s19 = ssub.s32 %s3451_s24, %s3658_s29  ;;  %p49_p6 = scmp.ne.s32.totalorder %s3447_s23, %s3443_s22 }
  0x45   : > { %p40_p2 = scmp.eq.s32.totalorder %s39_s19, 0  ;;  %p50_p4 = scmp.eq.s32.totalorder %s3451_s24, 0 }
  0x46   : > { %p55_p7 = scmp.ne.s32.totalorder %s3443_s22, %s3439_s1  ;;  %p3231_p8 = scmp.lt.s32.totalorder %s3451_s24, 2 }
  0x47   : > { %s3670_s4 = scalar_select %p40_p2, %s3447_s23, %s42_s30  }
  0x48   : > { %3222 = dma.hbm_to_vmem [thread:$0]  (!%p3602_p5), %s4079_s13, 16, %s565_s21, [#allocation8]  }
  0x49   : > { %4081 = sst [smem:[#allocation15_spill]] %s3670_s4  ;;  %p51_p9 = por %p50_p4, %p49_p6 }
  0x4a   : > { %p3674_p10 = por %p4058_p1, %p55_p7  ;;  %s593_s2 = sand.u32 1, %s3447_s23  }
  0x4b   : > { %s2850_s21 = sshll.u32 %s3451_s24, 4  ;;  %s4083_s27 = sld [smem:[#allocation16_spill]] }
  0x4c   : > { %s4082_s0 = scalar_select %p3674_p10, 1, 0 }
  0x4d   : > { %s596_s1 = scalar_lea.vmem [#allocation2], %s593_s2  ;;  %p3685_p5 = pnand %p3231_p8, %p51_p9 }
  0x4e   : > { %s603_s19 = sshll.u32 %s596_s1, 4  ;;  %s594_s10 = scalar_lea.sflag [#allocation3], %s593_s2  ;;  %s604_s19 = int_to_ptr.vmem [resolvable:$true] %s603_s19 }
  0x4f   : > { %p3383_p12 = pneg %p3685_p5 }
  0x51   : > { %s3683_s25 = scalar_lea.hbm %s4083_s27, %s2850_s21  ;;  %s3386_s28 = scalar_lea.hbm %s4083_s27, 32 }
  0x52   : > { %s3381_s13 = scalar_lea.hbm %s3683_s25, 16  ;;  %p3387_p6 = scmp.lt.s32.totalorder %s3683_s25, %s4083_s27 }
  0x53   : > { %p3382_p11 = scmp.ne.s32.totalorder %s3683_s25, %s3381_s13  ;;  %p3388_p2 = scmp.lt.s32.totalorder %s3386_s28, %s3381_s13 }
  0x55   : > { %p3384_p13 = pnand %p3383_p12, %p3382_p11  ;;  %p3389_p4 = por %p3388_p2, %p3387_p6 }
  0x57   : > { %p3385_p0 = pneg %p3384_p13 }
  0x59   : > { %p3390_p7 = pnand %p3389_p4, %p3385_p0 }
  0x5b   : > { %3393 = shalt.err (!%p3390_p7)
}
  0x5c   : > { %s3394_s1 = scalar_lea.vmem %s604_s19, 16  ;;  %s3457_s2 = smov [#allocation2]  }
  0x5d   : > { %p3395_p8 = scmp.ne.s32.totalorder %s604_s19, %s3394_s1  ;;  %s3399_s23 = sshll.u32 %s3457_s2, 4  ;;  %s3400_s23 = int_to_ptr.vmem [resolvable:$false] %s3399_s23 }
  0x5e   : > { %s3401_s29 = scalar_lea.vmem %s3400_s23, 32  ;;  %p3402_p11 = scmp.lt.s32.totalorder %s604_s19, %s3400_s23 }
  0x5f   : > { %p3397_p9 = pnand %p3395_p8, %p3383_p12  ;;  %p3403_p13 = scmp.lt.s32.totalorder %s3401_s29, %s3394_s1 }
  0x61   : > { %p3398_p1 = pneg %p3397_p9  ;;  %p3404_p10 = por %p3403_p13, %p3402_p11 }
  0x63   : > { %p3405_p3 = pnand %p3404_p10, %p3398_p1 }
  0x65   : > { %3408 = shalt.err (!%p3405_p3)
}
  0x66   : > { %3226 = dma.hbm_to_vmem [thread:$0]  (!%p3685_p5), %s3683_s25, 16, %s604_s19, %s594_s10  }
  0x67   : > { %p4085_p0 = scmp.ne.s32.totalorder %s4074_s26, 0 }
  0x68   : > { %s614_s13 = sand.u32 (!%p4085_p0), 1, %s3443_s22   ;;  %p4086_p12 = scmp.ne.s32.totalorder (!%p4085_p0), %s4082_s0, 0 }
  0x69   : > { %612 = sbr.rel (%p4085_p0) target bundleno = 2914 (0xb62), region = 100  ;;  %s615_s4 = scalar_lea.sflag (!%p4085_p0), [#allocation3], %s614_s13 }
  0x6a   : > { %s617_s24 = scalar_lea.vmem (!%p4085_p0), [#allocation2], %s614_s13 }
  0x6e   : > { %3426 = dma.done.wait (%p4086_p12), %s615_s4, 16  }
  0x6f   : > { %3428 = vsyncadd (%p4086_p12), %s615_s4, 4294967280  ;;  %p4087_p1 = scmp.eq.s32.totalorder %s3587_s3, 0 }
  0x71   : > { %3430 = dma.done.wait (%p4087_p1), [#allocation5], 32   ;;  %p4088_p3 = pmov %p4087_p1 }
  0x72   : > { %p4089_p10 = pmov %p4087_p1 }
  0x73   : > { %3432 = vsyncadd (%p4088_p3), [#allocation5], 4294967264 }
  0x74   : > { %3434 = dma.done.wait (%p4089_p10), [#allocation8], 32   ;;  %p4090_p5 = pmov %p4087_p1 }
  0x75   : > { %v3458_v0 = vmov 0.0   ;;  %vm3459_vm0 = vmmov 0   ;;  %s4091_s26 = sld [smem:[#allocation17_spill]]  ;;  %v694_v5 = vld [vmem:[%s617_s24] sm:$0x1]  ;;  %vm700_vm1 = vcmask 261120   ;;  %v933_v28 = vlaneseq }
  0x76   : > { %3436 = vsyncadd (%p4090_p5), [#allocation8], 4294967264  ;;  %3014 = vmatprep.subr.mxu0 %v3458_v0  ;;  %3022 = vmatprep.mubr.msk.f32.mxu0 %vm3459_vm0, %v3458_v0  ;;  %s4092_s1 = sld [smem:[#allocation19_spill]]  ;;  %v699_v8 = vld [vmem:[#allocation4] sm:$0x1]  ;;  %vm777_vm2 = vcmask 130048  }
  0x77   : > { %3025 = vmatprep.subr.mxu1 %v3458_v0  ;;  %3029 = vmatprep.mubr.msk.f32.mxu1 %vm3459_vm0, %v3458_v0  ;;  %v852_v12 = vld [vmem:[%s4040_s6] sm:$0xff]  ;;  %v2861_v13 = vld [vmem:[%s4040_s6 + $0x8] sm:$0xff]  ;;  %v3460_v15 = vmov 0   ;;  %vm853_vm3 = vcmask 64512   ;;  %v2864_v23 = vld [vmem:[%s4040_s6 + $0x10] sm:$0xff]  ;;  %v934_v29 = vshrl.u32 %v933_v28, 7 }
  0x78   : > { %v927_v14 = vld [vmem:[%s4039_s5] sm:$0x3]  ;;  %3275 = vset.pattern.permute.xlu0 %v3460_v15  ;;  %3276 = vset.pattern.permute.xlu1 %v3460_v15  ;;  %v2866_v16 = vld [vmem:[%s4039_s5 + $0x4] sm:$0x3]  ;;  %v2863_v17 = vld [vmem:[%s4039_s5 + $0x2] sm:$0x3] }
  0x79   : > { %930 = vperm.xlu0 %3275, %v927_v14   ;;  %1099 = vperm.xlu1 %3276, %v2866_v16   ;;  %v776_v18 = vld [vmem:[#allocation6] sm:$0x1]  ;;  %v1118_v24 = vld [vmem:[%s4043_s9 + $0x8] sm:$0xff]  ;;  %v2870_v25 = vld [vmem:[%s4043_s9 + $0x18] sm:$0xff]  ;;  %v935_v31 = vsub.s32 0, %v934_v29  ;;  %vm1272_vm4 = vcmask 1041408  }
  0x7a   : > { %v1117_v26 = vld [vmem:[%s4043_s9] sm:$0xff]  ;;  %v2869_v27 = vld [vmem:[%s4043_s9 + $0x10] sm:$0xff]  ;;  %vm1268_vm5 = vcmask 15360   ;;  %v2878_v55 = vld [vmem:[%s4043_s9 + $0x28] sm:$0xff]  ;;  %vm1738_vm6 = vcmask 1043456   ;;  %vm1734_vm7 = vcmask 31744  }
  0x7b   : > { %v698_v1 = vld [vmem:[%s4091_s26 + $0x18] sm:$0xff]  ;;  %v697_v2 = vld [vmem:[%s4091_s26 + $0x10] sm:$0xff]  ;;  %v696_v3 = vld [vmem:[%s4091_s26 + $0x8] sm:$0xff]  ;;  %vm2550_vm8 = vcmask 392192   ;;  %p689_p6 = scmp.lt.s32.totalorder %s3587_s3, 1  ;;  %s4094_s4 = sld [smem:[#allocation23_spill]] }
  0x7c   : > { %3015 = vmatpush3.msra.mxu0 %v698_v1  ;;  %v695_v4 = vld [vmem:[%s4091_s26] sm:$0xff]  ;;  %s4093_s2 = smov %s4092_s1  ;;  %v775_v6 = vld [vmem:[%s4092_s1 + $0x8] sm:$0xff]  ;;  %s4095_s23 = sld [smem:[#allocation24_spill]]  ;;  %vm2736_vm9 = vcmask 785408  }
  0x7d   : > { %3016 = vmatprep.subr.mxu0 %v3458_v0  ;;  %3026 = vmatpush3.msra.mxu1 %v775_v6  ;;  %v774_v7 = vld [vmem:[%s4093_s2] sm:$0xff]  ;;  %v2880_v1 = vld [vmem:[%s4042_s8 + $0x8] sm:$0xf]  ;;  %s4102_s3 = smov (!%p689_p6, %s3587_s3), 1 }
  0x7e   : > { %3017 = vmatpush3.msra.mxu0 %v697_v2  ;;  %3027 = vmatprep.subr.mxu1 %v3458_v0  ;;  %v2867_v47 = vld [vmem:[%s4041_s7] ss:$0 sm:$0xff]  ;;  %v2872_v51 = vld [vmem:[%s4042_s8 + $0x4] sm:$0xf]  ;;  %v2888_v14 = vld [vmem:[%s4045_s11 + $0x8] sm:$0xff]  ;;  %s2931_s20 = sshll.u32 %s4102_s3, 5 }
  0x7f   : > { %3018 = vmatprep.subr.mxu0 %v3458_v0  ;;  %3028 = vmatpush3.msra.mxu1 %v774_v7  ;;  %v1192_v52 = vld [vmem:[%s4042_s8] sm:$0xf]  ;;  %v2885_v7 = vld [vmem:[%s4046_s12 + $0x10] sm:$0xff] }
  0x80   : > { %3019 = vmatpush3.msra.mxu0 %v696_v3  ;;  %3032 = vmatprep.subr.mxu1 %v3458_v0  ;;  %v2877_v58 = vld [vmem:[%s4043_s9 + $0x20] sm:$0xff] }
  0x81   : > { %3020 = vmatprep.subr.mxu0 %v3458_v0  ;;  %1014 = vperm.xlu0 %3275, %v2863_v17   ;;  %v1583_v6 = vld [vmem:[%s4046_s12] sm:$0xff] }
  0x82   : > { %3021 = vmatpush3.msra.mxu0 %v695_v4  ;;  %v1584_v4 = vld [vmem:[%s4046_s12 + $0x8] sm:$0xff]  ;;  %v1658_v15 = vld [vmem:[%s4045_s11] sm:$0xff]  ;;  %s693_s29 = scalar_lea.vmem %s4095_s23, %s2931_s20 }
  0x83   : > { %3023 = vmatmul.mubr.msk.f32.vlgmr.msra.gmra.mxu0 %vm700_vm1, %v694_v5  ;;  %3037 = vmatprep.subr.mxu0 %v3458_v0  ;;  %v2886_v5 = vld [vmem:[%s4046_s12 + $0x18] sm:$0xff] }
  0x84   : > { %3039 = vmatprep.mubr.msk.f32.mxu0 %vm3459_vm0, %v3458_v0  ;;  %3038 = vmatpush3.msra.mxu0 %v2861_v13 }
  0x85   : > { %3047 = vmatprep.subr.mxu0 %v3458_v0 }
  0xf4   : > { %v931_v30 = vpop.permute.xlu0 %930  ;;  %v1100_v42 = vpop.permute.xlu1 %1099 }
  0xfc   : > { %v1015_v34 = vpop.permute.xlu0 %1014 }
 0x143   : > { %v770_v9 = vpop.f32.mrf.mxu0 }
 0x144   : > { %v771_v10 = vadd.f32 %v770_v9, %v699_v8  ;;  %v2883_v9 = vld [vmem:[#allocation7] ss:$0 sm:$0xff] }
 0x145   : > { %v3024_v11 = vpop.f32.mrf.mxu0 }
 0x146   : > { %3030 = vmatmul.mubr.msk.f32.vlgmr.msra.gmra.mxu1 %vm777_vm2, %v771_v10 }
 0x147   : > { %3034 = vmatprep.mubr.msk.f32.mxu1 %vm3459_vm0, %v3458_v0  ;;  %3033 = vmatpush3.msra.mxu1 %v852_v12 }
 0x148   : > { %3042 = vmatprep.subr.mxu1 %v3458_v0 }
 0x206   : > { %v847_v19 = vpop.f32.mrf.mxu1 }
 0x207   : > { %v848_v20 = vadd.f32 %v847_v19, %v776_v18  ;;  %v2894_v18 = vld [vmem:[%s4046_s12 + $0x28] sm:$0xff] }
 0x208   : > { %v3031_v21 = vpop.f32.mrf.mxu1 }
 0x209   : > { %v851_v22 = vmax.f32 %v848_v20, 0.0  ;;  %v2893_v21 = vld [vmem:[%s4046_s12 + $0x20] sm:$0xff] }
 0x20b   : > { %3035 = vmatmul.mubr.msk.f32.vlgmr.msra.gmra.mxu1 %vm853_vm3, %v851_v22  ;;  %3040 = vmatmul.mubr.msk.f32.vlgmr.msra.gmra.mxu0 %vm853_vm3, %v851_v22 }
 0x20c   : > { %3043 = vmatpush3.msra.mxu1 %v2864_v23  ;;  %3044 = vmatprep.mubr.msk.f32.mxu1 %vm3459_vm0, %v3458_v0 }
 0x20d   : > { %3054 = vmatprep.subr.mxu1 %v3458_v0  ;;  %3051 = vmatprep.mubr.msk.f32.mxu0 %vm3459_vm0, %v3458_v0 }
 0x20e   : > { %3048 = vmatpush3.msra.mxu0 %v1118_v24 }
 0x20f   : > { %3045 = vmatmul.mubr.msk.f32.vlgmr.msra.gmra.mxu1 %vm853_vm3, %v851_v22  ;;  %3049 = vmatprep.subr.mxu0 %v3458_v0 }
 0x210   : > { %3058 = vmatprep.mubr.msk.f32.mxu1 %vm3459_vm0, %v3458_v0  ;;  %3055 = vmatpush3.msra.mxu1 %v2870_v25 }
 0x211   : > { %3056 = vmatprep.subr.mxu1 %v3458_v0  ;;  %3050 = vmatpush3.msra.mxu0 %v1117_v26 }
 0x212   : > { %3057 = vmatpush3.msra.mxu1 %v2869_v27  ;;  %3061 = vmatprep.subr.mxu0 %v3458_v0  ;;  %v2896_v27 = vld [vmem:[%s4045_s11 + $0x10] sm:$0xff] }
 0x213   : > { %3066 = vmatprep.subr.mxu1 %v3458_v0 }
 0x2cb   : > { %v923_v32 = vpop.f32.mrf.mxu1  ;;  %v1006_v33 = vpop.f32.mrf.mxu0 }
 0x2cc   : > { %v936_v35 = vrot.slane %v923_v32, %v935_v31  ;;  %v1020_v36 = vrot.slane %v1006_v33, %v935_v31  ;;  %v2051_v32 = vld [vmem:[%s4049_s15 + $0x10] sm:$0xff] }
 0x2cd   : > { %v3036_v37 = vpop.f32.mrf.mxu1  ;;  %v3041_v38 = vpop.f32.mrf.mxu0  ;;  %v2903_v33 = vld [vmem:[%s4049_s15 + $0x30] sm:$0xff] }
 0x2ce   : > { %v937_v39 = vmul.f32 %v936_v35, %v931_v30  ;;  %v1021_v40 = vmul.f32 %v1020_v36, %v1015_v34  ;;  %v2052_v30 = vld [vmem:[%s4049_s15 + $0x18] sm:$0xff]  ;;  %v2050_v34 = vld [vmem:[%s4049_s15 + $0x8] sm:$0xff]  ;;  %v2049_v36 = vld [vmem:[%s4049_s15] sm:$0xff] }
 0x2cf   : > { %v1091_v41 = vpop.f32.mrf.mxu1  ;;  %v2902_v35 = vld [vmem:[%s4049_s15 + $0x28] sm:$0xff]  ;;  %v2901_v37 = vld [vmem:[%s4049_s15 + $0x20] sm:$0xff] }
 0x2d0   : > { %v1105_v43 = vrot.slane %v1091_v41, %v935_v31  ;;  %v1022_v45 = vadd.f32 %v1021_v40, %v937_v39  ;;  %v2904_v31 = vld [vmem:[%s4049_s15 + $0x38] sm:$0xff]  ;;  %v2899_v39 = vld [vmem:[#allocation9] ss:$0 sm:$0xff] }
 0x2d1   : > { %v3046_v44 = vpop.f32.mrf.mxu1 }
 0x2d2   : > { %v1106_v46 = vmul.f32 %v1105_v43, %v1100_v42  ;;  %v2906_v44 = vld [vmem:[%s4048_s14 + $0x10] sm:$0xff] }
 0x2d4   : > { %v1107_v48 = vadd.f32 %v1106_v46, %v1022_v45  ;;  %v2126_v45 = vld [vmem:[%s4048_s14] sm:$0xff] }
 0x2d6   : > { %v1115_v49 = vadd.f32 %v2867_v47, %v1107_v48  ;;  %v2907_v48 = vld [vmem:[%s4048_s14 + $0x18] sm:$0xff] }
 0x2d8   : > { %v1116_v50 = vmax.f32 %v1115_v49, 0.0  ;;  %v2127_v49 = vld [vmem:[%s4048_s14 + $0x8] sm:$0xff] }
 0x2da   : > { %3052 = vmatmul.mubr.msk.f32.vlgmr.msra.gmra.mxu0 %vm777_vm2, %v1116_v50  ;;  %3059 = vmatmul.mubr.msk.f32.vlgmr.msra.gmra.mxu1 %vm777_vm2, %v1116_v50 }
 0x2db   : > { %3063 = vmatprep.mubr.msk.f32.mxu0 %vm3459_vm0, %v3458_v0  ;;  %3068 = vmatprep.mubr.msk.f32.mxu1 %vm3459_vm0, %v3458_v0 }
 0x39a   : > { %v1188_v53 = vpop.f32.mrf.mxu0  ;;  %v1262_v54 = vpop.f32.mrf.mxu1 }
 0x39b   : > { %3062 = vmatpush3.msk.msra.mxu0 %vm1272_vm4, %v1262_v54  ;;  %3067 = vmatpush3.msk.msra.mxu1 %vm1272_vm4, %v1188_v53  ;;  %v2914_v53 = vld [vmem:[%s4049_s15 + $0x50] sm:$0xff]  ;;  %v2913_v54 = vld [vmem:[%s4049_s15 + $0x48] sm:$0xff] }
 0x39c   : > { %v3053_v56 = vpop.f32.mrf.mxu0  ;;  %v3060_v57 = vpop.f32.mrf.mxu1  ;;  %3064 = vmatmul.mubr.msk.f32.vlgmr.msra.gmra.mxu0 %vm1268_vm5, %v2872_v51  ;;  %3069 = vmatmul.mubr.msk.f32.vlgmr.msra.gmra.mxu1 %vm1268_vm5, %v1192_v52  ;;  %v2915_v52 = vld [vmem:[%s4049_s15 + $0x58] sm:$0xff] }
 0x39d   : > { %3071 = vmatprep.subr.mxu0 %v3458_v0  ;;  %3075 = vmatprep.mubr.msk.f32.mxu0 %vm3459_vm0, %v3458_v0  ;;  %v2917_v56 = vld [vmem:[%s4048_s14 + $0x20] sm:$0xff] }
 0x39e   : > { %3072 = vmatpush3.msra.mxu0 %v2878_v55  ;;  %3078 = vmatprep.subr.mxu1 %v3458_v0  ;;  %v2912_v55 = vld [vmem:[%s4049_s15 + $0x40] sm:$0xff] }
 0x39f   : > { %3073 = vmatprep.subr.mxu0 %v3458_v0  ;;  %3080 = vmatprep.mubr.msk.f32.mxu1 %vm3459_vm0, %v3458_v0 }
 0x3a0   : > { %3074 = vmatpush3.msra.mxu0 %v2877_v58 }
 0x3a1   : > { %3076 = vmatmul.mubr.msk.f32.vlgmr.msra.gmra.mxu0 %vm777_vm2, %v1116_v50  ;;  %3083 = vmatprep.subr.mxu0 %v3458_v0 }
 0x3a2   : > { %3087 = vmatprep.mubr.msk.f32.mxu0 %vm3459_vm0, %v3458_v0  ;;  %3084 = vmatpush3.msra.mxu0 %v1584_v4 }
 0x3a3   : > { %3085 = vmatprep.subr.mxu0 %v3458_v0 }
 0x3a4   : > { %3086 = vmatpush3.msra.mxu0 %v1583_v6 }
 0x3a5   : > { %3097 = vmatprep.subr.mxu0 %v3458_v0 }
 0x45c   : > { %v1342_v59 = vpop.f32.mrf.mxu0  ;;  %v1418_v60 = vpop.f32.mrf.mxu1 }
 0x45d   : > { %v1419_v61 = vadd.f32 %v1418_v60, %v1342_v59  ;;  %v2918_v60 = vld [vmem:[%s4048_s14 + $0x28] sm:$0xff] }
 0x45e   : > { %v3065_v62 = vpop.f32.mrf.mxu0  ;;  %v3070_v63 = vpop.f32.mrf.mxu1 }
 0x45f   : > { %v2548_v62 = vld [vmem:[%s4052_s18 + $0x20] sm:$0xff]  ;;  %v2547_v63 = vld [vmem:[%s4052_s18 + $0x18] sm:$0xff] }
 0x461   : > { %v1491_v2 = vpop.f32.mrf.mxu0 }
 0x462   : > { %3079 = vmatpush3.msk.msra.mxu1 %vm1272_vm4, %v1491_v2  ;;  %v2545_v2 = vld [vmem:[%s4052_s18 + $0x8] sm:$0xff] }
 0x463   : > { %v3077_v3 = vpop.f32.mrf.mxu0  ;;  %3081 = vmatmul.mubr.msk.f32.vlgmr.msra.gmra.mxu1 %vm1268_vm5, %v2880_v1  ;;  %3090 = vmatprep.subr.mxu1 %v3458_v0  ;;  %v2546_v1 = vld [vmem:[%s4052_s18 + $0x10] sm:$0xff] }
 0x464   : > { %3094 = vmatprep.mubr.msk.f32.mxu1 %vm3459_vm0, %v3458_v0  ;;  %3091 = vmatpush3.msra.mxu1 %v2886_v5  ;;  %v2544_v3 = vld [vmem:[%s4052_s18] sm:$0xff] }
 0x465   : > { %3092 = vmatprep.subr.mxu1 %v3458_v0 }
 0x466   : > { %3093 = vmatpush3.msra.mxu1 %v2885_v7 }
 0x467   : > { %3102 = vmatprep.subr.mxu1 %v3458_v0 }
 0x523   : > { %v1569_v8 = vpop.f32.mrf.mxu1 }
 0x524   : > { %v1573_v10 = vadd.f32 %v1569_v8, %v1419_v61 }
 0x525   : > { %v3082_v11 = vpop.f32.mrf.mxu1 }
 0x526   : > { %v1581_v12 = vadd.f32 %v2883_v9, %v1573_v10  ;;  %v2921_v10 = vld [vmem:[%s4050_s16] ss:$0 sm:$0xff] }
 0x528   : > { %v1582_v13 = vmax.f32 %v1581_v12, 0.0 }
 0x52a   : > { %3088 = vmatmul.mubr.msk.f32.vlgmr.msra.gmra.mxu0 %vm777_vm2, %v1582_v13  ;;  %3095 = vmatmul.mubr.msk.f32.vlgmr.msra.gmra.mxu1 %vm777_vm2, %v1582_v13 }
 0x52b   : > { %3099 = vmatprep.mubr.msk.f32.mxu0 %vm3459_vm0, %v3458_v0  ;;  %3104 = vmatprep.mubr.msk.f32.mxu1 %vm3459_vm0, %v3458_v0 }
 0x5ea   : > { %v1654_v16 = vpop.f32.mrf.mxu0  ;;  %v1728_v17 = vpop.f32.mrf.mxu1 }
 0x5eb   : > { %3098 = vmatpush3.msk.msra.mxu0 %vm1738_vm6, %v1728_v17  ;;  %3103 = vmatpush3.msk.msra.mxu1 %vm1738_vm6, %v1654_v16  ;;  %v2540_v17 = vld [vmem:[%s4051_s17] sm:$0xff] }
 0x5ec   : > { %v3089_v19 = vpop.f32.mrf.mxu0  ;;  %v3096_v20 = vpop.f32.mrf.mxu1  ;;  %3100 = vmatmul.mubr.msk.f32.vlgmr.msra.gmra.mxu0 %vm1734_vm7, %v2888_v14  ;;  %3105 = vmatmul.mubr.msk.f32.vlgmr.msra.gmra.mxu1 %vm1734_vm7, %v1658_v15 }
 0x5ed   : > { %3107 = vmatprep.subr.mxu0 %v3458_v0  ;;  %3111 = vmatprep.mubr.msk.f32.mxu0 %vm3459_vm0, %v3458_v0  ;;  %v2541_v20 = vld [vmem:[%s4051_s17 + $0x8] sm:$0xff] }
 0x5ee   : > { %3108 = vmatpush3.msra.mxu0 %v2894_v18  ;;  %3114 = vmatprep.subr.mxu1 %v3458_v0 }
 0x5ef   : > { %3109 = vmatprep.subr.mxu0 %v3458_v0  ;;  %3116 = vmatprep.mubr.msk.f32.mxu1 %vm3459_vm0, %v3458_v0 }
 0x5f0   : > { %3110 = vmatpush3.msra.mxu0 %v2893_v21  ;;  %v2542_v21 = vld [vmem:[%s4051_s17 + $0x10] sm:$0xff] }
 0x5f1   : > { %3112 = vmatmul.mubr.msk.f32.vlgmr.msra.gmra.mxu0 %vm777_vm2, %v1582_v13  ;;  %3119 = vmatprep.subr.mxu0 %v3458_v0 }
 0x5f2   : > { %3127 = vmatprep.mubr.msk.f32.mxu0 %vm3459_vm0, %v3458_v0  ;;  %3120 = vmatpush3.msra.mxu0 %v2052_v30 }
 0x5f3   : > { %3121 = vmatprep.subr.mxu0 %v3458_v0 }
 0x5f4   : > { %3122 = vmatpush3.msra.mxu0 %v2051_v32 }
 0x5f5   : > { %3123 = vmatprep.subr.mxu0 %v3458_v0 }
 0x5f6   : > { %3124 = vmatpush3.msra.mxu0 %v2050_v34 }
 0x5f7   : > { %3125 = vmatprep.subr.mxu0 %v3458_v0 }
 0x5f8   : > { %3126 = vmatpush3.msra.mxu0 %v2049_v36 }
 0x6ac   : > { %v1808_v22 = vpop.f32.mrf.mxu0  ;;  %v1884_v23 = vpop.f32.mrf.mxu1 }
 0x6ad   : > { %v1885_v24 = vadd.f32 %v1884_v23, %v1808_v22  ;;  %v2543_v22 = vld [vmem:[%s4051_s17 + $0x18] sm:$0xff]  ;;  %v2924_v23 = vld [vmem:[%s4094_s4] ss:$0 sm:$0xff] }
 0x6ae   : > { %v3101_v25 = vpop.f32.mrf.mxu0  ;;  %v3106_v26 = vpop.f32.mrf.mxu1 }
 0x6b1   : > { %v1957_v28 = vpop.f32.mrf.mxu0 }
 0x6b2   : > { %3115 = vmatpush3.msk.msra.mxu1 %vm1738_vm6, %v1957_v28 }
 0x6b3   : > { %v3113_v29 = vpop.f32.mrf.mxu0  ;;  %3117 = vmatmul.mubr.msk.f32.vlgmr.msra.gmra.mxu1 %vm1734_vm7, %v2896_v27  ;;  %3130 = vmatprep.subr.mxu1 %v3458_v0 }
 0x6b4   : > { %3138 = vmatprep.mubr.msk.f32.mxu1 %vm3459_vm0, %v3458_v0  ;;  %3131 = vmatpush3.msra.mxu1 %v2904_v31 }
 0x6b5   : > { %3132 = vmatprep.subr.mxu1 %v3458_v0 }
 0x6b6   : > { %3133 = vmatpush3.msra.mxu1 %v2903_v33 }
 0x6b7   : > { %3134 = vmatprep.subr.mxu1 %v3458_v0 }
 0x6b8   : > { %3135 = vmatpush3.msra.mxu1 %v2902_v35 }
 0x6b9   : > { %3136 = vmatprep.subr.mxu1 %v3458_v0 }
 0x6ba   : > { %3137 = vmatpush3.msra.mxu1 %v2901_v37 }
 0x773   : > { %v2035_v38 = vpop.f32.mrf.mxu1 }
 0x774   : > { %v2039_v40 = vadd.f32 %v2035_v38, %v1885_v24 }
 0x775   : > { %v3118_v41 = vpop.f32.mrf.mxu1 }
 0x776   : > { %v2047_v42 = vadd.f32 %v2899_v39, %v2039_v40 }
 0x778   : > { %v2048_v43 = vmax.f32 %v2047_v42, 0.0 }
 0x77a   : > { %3128 = vmatmul.mubr.msk.f32.vlgmr.msra.gmra.mxu0 %vm700_vm1, %v2048_v43  ;;  %3139 = vmatmul.mubr.msk.f32.vlgmr.msra.gmra.mxu1 %vm700_vm1, %v2048_v43 }
 0x77b   : > { %3143 = vmatprep.mubr.msk.f32.mxu0 %vm853_vm3, %v2906_v44  ;;  %3148 = vmatprep.mubr.msk.f32.mxu1 %vm853_vm3, %v2126_v45 }
 0x83a   : > { %v2122_v46 = vpop.f32.mrf.mxu0  ;;  %v2199_v47 = vpop.f32.mrf.mxu1 }
 0x83b   : > { %3141 = vmatprep.subr.mxu0 %v2199_v47  ;;  %3146 = vmatprep.subr.mxu1 %v2122_v46 }
 0x83c   : > { %v3129_v50 = vpop.f32.mrf.mxu0  ;;  %v3140_v51 = vpop.f32.mrf.mxu1  ;;  %3142 = vmatpush3.msra.mxu0 %v2199_v47  ;;  %3147 = vmatpush3.msra.mxu1 %v2122_v46 }
 0x83d   : > { %3144 = vmatmul.mubr.msk.f32.vlgmr.msra.gmra.mxu0 %vm853_vm3, %v2907_v48  ;;  %3149 = vmatmul.mubr.msk.f32.vlgmr.msra.gmra.mxu1 %vm853_vm3, %v2127_v49 }
 0x83e   : > { %3151 = vmatprep.subr.mxu0 %v3458_v0  ;;  %3159 = vmatprep.mubr.msk.f32.mxu0 %vm3459_vm0, %v3458_v0 }
 0x83f   : > { %3152 = vmatpush3.msra.mxu0 %v2915_v52  ;;  %3164 = vmatprep.mubr.msk.f32.mxu1 %vm853_vm3, %v2917_v56 }
 0x840   : > { %3153 = vmatprep.subr.mxu0 %v3458_v0 }
 0x841   : > { %3154 = vmatpush3.msra.mxu0 %v2914_v53 }
 0x842   : > { %3155 = vmatprep.subr.mxu0 %v3458_v0 }
 0x843   : > { %3156 = vmatpush3.msra.mxu0 %v2913_v54 }
 0x844   : > { %3157 = vmatprep.subr.mxu0 %v3458_v0  ;;  %v2549_v0 = vld [vmem:[%s4052_s18 + $0x28] sm:$0xff] }
 0x845   : > { %3158 = vmatpush3.msra.mxu0 %v2912_v55 }
 0x846   : > { %3160 = vmatmul.mubr.msk.f32.vlgmr.msra.gmra.mxu0 %vm700_vm1, %v2048_v43 }
 0x847   : > { %3186 = vmatprep.mubr.msk.f32.mxu0 %vm777_vm2, %v2540_v17 }
 0x8fd   : > { %v3145_v57 = vpop.f32.mrf.mxu0  ;;  %v3150_v4 = vpop.f32.mrf.mxu1 }
 0x8fe   : > { %v2365_v6 = vadd.f32 %v3150_v4, %v3145_v57 }
 0x8ff   : > { %v2278_v58 = vpop.f32.mrf.mxu0  ;;  %v2359_v5 = vpop.f32.mrf.mxu1 }
 0x900   : > { %v2360_v8 = vadd.f32 %v2359_v5, %v2278_v58 }
 0x906   : > { %v2439_v59 = vpop.f32.mrf.mxu0 }
 0x907   : > { %3162 = vmatprep.subr.mxu1 %v2439_v59 }
 0x908   : > { %v3161_v61 = vpop.f32.mrf.mxu0  ;;  %3163 = vmatpush3.msra.mxu1 %v2439_v59 }
 0x909   : > { %3165 = vmatmul.mubr.msk.f32.vlgmr.msra.gmra.mxu1 %vm853_vm3, %v2918_v60  ;;  %3167 = vmatprep.subr.mxu1 %v2549_v0 }
 0x90a   : > { %3168 = vmatpush3.msra.mxu1 %v2549_v0 }
 0x90b   : > { %3169 = vmatprep.subr.mxu1 %v2548_v62 }
 0x90c   : > { %3170 = vmatpush3.msra.mxu1 %v2548_v62 }
 0x90d   : > { %3171 = vmatprep.subr.mxu1 %v2547_v63 }
 0x90e   : > { %3172 = vmatpush3.msra.mxu1 %v2547_v63 }
 0x90f   : > { %3173 = vmatprep.subr.mxu1 %v2546_v1 }
 0x910   : > { %3174 = vmatpush3.msra.mxu1 %v2546_v1 }
 0x911   : > { %3175 = vmatprep.subr.mxu1 %v2545_v2 }
 0x912   : > { %3176 = vmatpush3.msra.mxu1 %v2545_v2 }
 0x913   : > { %3177 = vmatprep.subr.mxu1 %v2544_v3 }
 0x914   : > { %3178 = vmatpush3.msra.mxu1 %v2544_v3 }
 0x9c9   : > { %v3166_v7 = vpop.f32.mrf.mxu1 }
 0x9ca   : > { %v2528_v9 = vadd.f32 %v3166_v7, %v2365_v6 }
 0x9cb   : > { %v2518_v11 = vpop.f32.mrf.mxu1 }
 0x9cc   : > { %v2527_v12 = vadd.f32 %v2518_v11, %v2360_v8  ;;  %v2537_v13 = vadd.f32 %v2921_v10, %v2528_v9 }
 0x9ce   : > { %v2536_v14 = vadd.f32 %v2921_v10, %v2527_v12  ;;  %v2539_v16 = vmax.f32 %v2537_v13, 0.0 }
 0x9d0   : > { %v2538_v15 = vmax.f32 %v2536_v14, 0.0 }
 0x9d2   : > { %3179 = vmatprep.mubr.msk.f32.mxu1 %vm2550_vm8, %v2538_v15 }
 0x9d3   : > { %3180 = vmatmul.mubr.msk.f32.vlgmr.msra.gmra.mxu1 %vm2550_vm8, %v2539_v16 }
 0xa93   : > { %v3181_v18 = vpop.f32.mrf.mxu1 }
 0xa94   : > { %3182 = vmatprep.subr.mxu0 %v3181_v18 }
 0xa95   : > { %v2623_v19 = vpop.f32.mrf.mxu1  ;;  %3183 = vmatpush3.msra.mxu0 %v3181_v18 }
 0xa96   : > { %3184 = vmatprep.subr.mxu0 %v2623_v19 }
 0xa97   : > { %3185 = vmatpush3.msra.mxu0 %v2623_v19 }
 0xa98   : > { %3187 = vmatmul.mubr.msk.f32.vlgmr.msra.gmra.mxu0 %vm777_vm2, %v2541_v20 }
 0xa99   : > { %3189 = vmatprep.mubr.msk.f32.mxu0 %vm777_vm2, %v2542_v21 }
 0xa9c   : > { %3190 = vmatmul.mubr.msk.f32.gmra.mxu0 %vm777_vm2, %v2543_v22 }
 0xb58   : > { %v3188_v24 = vpop.f32.mrf.mxu0 }
 0xb59   : > { %v2723_v25 = vadd.f32 %v3188_v24, %v2924_v23 }
 0xb5a   : > { %v2717_v26 = vpop.f32.mrf.mxu0 }
 0xb5b   : > { %2738 = vst.msk [vmem:[%s693_s29 + $0x8] sm:$0xff] %vm2736_vm9, %v2723_v25  ;;  %v2718_v27 = vadd.f32 %v2924_v23, %v2717_v26 }
 0xb5c   : > { %v3191_v28 = vpop.f32.mrf.mxu0 }
 0xb5d   : > { %2737 = vst.msk [vmem:[%s693_s29] sm:$0xff] %vm2736_vm9, %v2718_v27  ;;  %v2733_v29 = vadd.f32 %v3191_v28, %v2924_v23 }
 0xb5e   : > { %v2727_v30 = vpop.f32.mrf.mxu0 }
 0xb5f   : > { %2740 = vst.msk [vmem:[%s693_s29 + $0x18] sm:$0xff] %vm2736_vm9, %v2733_v29  ;;  %v2728_v31 = vadd.f32 %v2924_v23, %v2727_v30 }
 0xb61   : > { %2739 = vst.msk [vmem:[%s693_s29 + $0x10] sm:$0xff] %vm2736_vm9, %v2728_v31 }
 0xb62 PF: > { %s4096_s24 = sld [smem:[#allocation14_spill]]  ;;  %s4099_s1 = smov %s3443_s22 }
 0xb63   : > { %s4097_s3 = sld [smem:[#allocation13_spill]] }
 0xb64   : > { %s4098_s23 = sld [smem:[#allocation15_spill]] }
 0xb68   : > { %p32_p2 = scmp.ge.s32.totalorder %s4096_s24, 4  }
 0xb69   : > { %s4100_s22 = smov %s4097_s3 }
 0xb6a   :  { %34 = sbr.rel (!%p32_p2) target bundleno = 15 (0xf), region = 172 }
 0xb6f   :  { %2762 = vsyncpa [#allocation3], 1 }
 0xb70   :  { %2764 = vsyncpa [#allocation3 + $0x1], 1 }
 0xb71   :  { %2765 = vsyncpa [#allocation5], 1 }
 0xb72   :  { %2766 = vsyncpa [#allocation8], 1 }

</bundles_post_ra>
